<compile_context>
chip_gen: v6e
topology: v6e:2x2x1
jax: 0.10.0
libtpu: 0.0.40
codegen_flags: <defaults>
</compile_context>

<pallas_src>
import functools
import math

import jax
import jax.numpy as jnp
from jax.experimental import pallas as pl
from jax.experimental.pallas import tpu as pltpu


def _round_up(x: int, m: int) -> int:
    return ((x + m - 1) // m) * m


def _vmem_limit_bytes() -> int:
    """Generation-aware scoped-VMEM limit (v7x has 64 MiB/TC, v5e/v6e 128 MiB)."""
    try:
        cap = int(pltpu.get_tpu_info().vmem_capacity_bytes)
    except Exception:  # no TPU / interpret mode / older API
        cap = 128 * 1024 * 1024
    return max(32 * 1024 * 1024, min(int(cap * 0.6), 100 * 1024 * 1024))


# ---------------------------------------------------------------------------
# Tiled linear:  y = x @ W_t + b   (f32 VMEM accumulator, optional K tiling)
# ---------------------------------------------------------------------------
def _linear_kernel(x_ref, w_ref, b_ref, o_ref, acc_ref):
    kk = pl.program_id(2)

    @pl.when(kk == 0)
    def _():
        acc_ref[...] = jnp.zeros_like(acc_ref)

    acc_ref[...] += jnp.dot(x_ref[...], w_ref[...],
                            preferred_element_type=jnp.float32)

    @pl.when(kk == pl.num_programs(2) - 1)
    def _():
        o_ref[...] = (acc_ref[...] + b_ref[...].astype(jnp.float32)).astype(o_ref.dtype)


def _linear(x2d, w_t, bias, *, block_m=256, vmem_limit=None):
    M, K = x2d.shape
    K2, N = w_t.shape
    assert K == K2
    dt = x2d.dtype
    isz = jnp.dtype(dt).itemsize
    limit = vmem_limit if vmem_limit is not None else _vmem_limit_bytes()
    budget = int(limit * 0.7)

    tm = min(block_m, _round_up(M, 8))

    def usage(tm_, tk_, tn_):
        return (2 * tm_ * tk_ * isz            # x blocks (double-buffered)
                + 2 * (tk_ * tn_ + tn_) * isz  # weight + bias blocks
                + 2 * tm_ * tn_ * isz          # output blocks
                + tm_ * tn_ * 4)               # f32 accumulator scratch

    # Prefer the full weight resident in VMEM: x is then streamed exactly once.
    tn, tk = N, K
    while usage(tm, tk, tn) > budget and tn > 128:
        tn = max(128, _round_up(tn // 2, 128))
    while usage(tm, tk, tn) > budget and tk > 512:
        tk = max(512, _round_up(tk // 2, 8))

    M_pad = _round_up(M, tm)
    K_pad = _round_up(K, tk)
    N_pad = _round_up(N, tn)
    if (M_pad, K_pad) != (M, K):
        x2d = jnp.pad(x2d, ((0, M_pad - M), (0, K_pad - K)))
    if (K_pad, N_pad) != (K, N):
        w_t = jnp.pad(w_t, ((0, K_pad - K), (0, N_pad - N)))
    if N_pad != N:
        bias = jnp.pad(bias, ((0, 0), (0, N_pad - N)))

    n_t, m_t, k_t = N_pad // tn, M_pad // tm, K_pad // tk
    cost = pl.CostEstimate(
        flops=int(2 * M_pad * K_pad * N_pad),
        transcendentals=0,
        bytes_accessed=int(isz * (n_t * M_pad * K_pad
                                  + (m_t if k_t > 1 else 1) * K_pad * N_pad
                                  + N_pad + M_pad * N_pad)),
    )

    out = pl.pallas_call(
        _linear_kernel,
        out_shape=jax.ShapeDtypeStruct((M_pad, N_pad), dt),
        grid_spec=pltpu.PrefetchScalarGridSpec(
            num_scalar_prefetch=0,
            grid=(n_t, m_t, k_t),   # weight-column axis outermost, K innermost
            in_specs=[
                pl.BlockSpec((tm, tk), lambda j, i, kk: (i, kk)),   # x row tile
                pl.BlockSpec((tk, tn), lambda j, i, kk: (kk, j)),   # weight slab
                pl.BlockSpec((1, tn), lambda j, i, kk: (0, j)),     # bias slab
            ],
            out_specs=pl.BlockSpec((tm, tn), lambda j, i, kk: (i, j)),
            scratch_shapes=[pltpu.VMEM((tm, tn), jnp.float32)],
        ),
        compiler_params=pltpu.CompilerParams(
            dimension_semantics=("parallel", "parallel", "arbitrary"),
            vmem_limit_bytes=limit,
        ),
        cost_estimate=cost,
    )(x2d, w_t, bias)

    if (M_pad, N_pad) != (M, N):
        out = out[:M, :N]
    return out


# ---------------------------------------------------------------------------
# Flash-style multi-head attention (all heads per tile, online softmax)
# ---------------------------------------------------------------------------
def _make_flash_kernel(tk, t_actual, needs_mask, exp_dtype, approx_recip):
    def kernel(q_ref, k_ref, v_ref, o_ref, m_sc, l_sc, acc_sc):
        ki = pl.program_id(2)

        @pl.when(ki == 0)
        def _():
            m_sc[...] = jnp.full_like(m_sc, -jnp.inf)
            l_sc[...] = jnp.zeros_like(l_sc)
            acc_sc[...] = jnp.zeros_like(acc_sc)

        q = q_ref[0]   # (H, tq, D) -- 1/sqrt(D) already folded into Wq/bq
        k = k_ref[0]   # (H, tk, D)
        v = v_ref[0]   # (H, tk, D)

        s = jnp.einsum("hqd,hkd->hqk", q, k, preferred_element_type=jnp.float32)
        if needs_mask:  # mask padded kv positions (only generated when T was padded)
            kv_pos = ki * tk + jax.lax.broadcasted_iota(jnp.int32, (1, 1, tk), 2)
            s = jnp.where(kv_pos < t_actual, s, -1e30)

        m_prev = m_sc[...]
        m_new = jnp.maximum(m_prev, s.max(axis=-1, keepdims=True))
        alpha = jnp.exp(m_prev - m_new)
        p = jnp.exp((s - m_new).astype(exp_dtype))   # bf16 exp on the bf16 path (EUP)
        l_sc[...] = alpha * l_sc[...] + jnp.sum(p, axis=-1, keepdims=True,
                                                dtype=jnp.float32)
        acc_sc[...] = alpha * acc_sc[...] + jnp.einsum(
            "hqk,hkd->hqd", p.astype(v.dtype), v,
            preferred_element_type=jnp.float32)
        m_sc[...] = m_new

        @pl.when(ki == pl.num_programs(2) - 1)
        def _():
            l = l_sc[...]
            inv = pl.reciprocal(l, approx=True) if approx_recip else 1.0 / l
            o_ref[0] = (acc_sc[...] * inv).astype(o_ref.dtype)

    return kernel


def _flash_attention(q, k, v, *, block_q=512, block_kv=512, vmem_limit=None):
    B, H, T, D = q.shape
    dt = q.dtype
    isz = jnp.dtype(dt).itemsize
    limit = vmem_limit if vmem_limit is not None else _vmem_limit_bytes()
    budget = int(limit * 0.7)

    tq = min(block_q, _round_up(T, 8))
    tk = min(block_kv, _round_up(T, 8))

    def usage(tq_, tk_):
        return (2 * H * tq_ * D * isz          # q blocks
                + 2 * 2 * H * tk_ * D * isz    # k + v blocks
                + 2 * H * tq_ * D * isz        # output blocks
                + H * tq_ * D * 4              # f32 accumulator
                + 2 * H * tq_ * 128 * 4)       # m/l stats (lane-padded)

    while usage(tq, tk) > budget and tk > 128:
        tk = max(128, _round_up(tk // 2, 8))
    while usage(tq, tk) > budget and tq > 128:
        tq = max(128, _round_up(tq // 2, 8))

    # v7x megacore: keep at least 2 programs on the parallel (B, q-tile) axes.
    while B * pl.cdiv(T, tq) < 2 and tq > 8:
        tq = max(8, _round_up(tq // 2, 8))

    step = tq * tk // math.gcd(tq, tk)
    T_pad = _round_up(T, step)
    needs_mask = T_pad != T
    if needs_mask:
        pad = ((0, 0), (0, 0), (0, T_pad - T), (0, 0))
        q = jnp.pad(q, pad)
        k = jnp.pad(k, pad)
        v = jnp.pad(v, pad)

    q_tiles, kv_tiles = T_pad // tq, T_pad // tk
    grid = (B, q_tiles, kv_tiles)

    is_bf16 = dt == jnp.bfloat16
    kernel = _make_flash_kernel(
        tk, T, needs_mask,
        exp_dtype=jnp.bfloat16 if is_bf16 else jnp.float32,
        approx_recip=is_bf16,   # exact softmax reciprocal on the f32 path
    )

    cost = pl.CostEstimate(
        flops=int(4 * B * H * T_pad * T_pad * D),
        transcendentals=int(B * H * T_pad * T_pad),
        # q read + output write once per row; K/V re-read once per q-tile.
        bytes_accessed=int(isz * B * H * D * T_pad * (2 + 2 * q_tiles)),
    )

    out = pl.pallas_call(
        kernel,
        out_shape=jax.ShapeDtypeStruct((B, H, T_pad, D), dt),
        grid_spec=pltpu.PrefetchScalarGridSpec(
            num_scalar_prefetch=0,
            grid=grid,
            in_specs=[
                pl.BlockSpec((1, H, tq, D), lambda b, qi, ki: (b, 0, qi, 0)),
                pl.BlockSpec((1, H, tk, D), lambda b, qi, ki: (b, 0, ki, 0)),
                pl.BlockSpec((1, H, tk, D), lambda b, qi, ki: (b, 0, ki, 0)),
            ],
            out_specs=pl.BlockSpec((1, H, tq, D), lambda b, qi, ki: (b, 0, qi, 0)),
            scratch_shapes=[
                pltpu.VMEM((H, tq, 1), jnp.float32),   # running max m
                pltpu.VMEM((H, tq, 1), jnp.float32),   # running denom l
                pltpu.VMEM((H, tq, D), jnp.float32),   # output accumulator
            ],
        ),
        compiler_params=pltpu.CompilerParams(
            dimension_semantics=("parallel", "parallel", "arbitrary"),
            vmem_limit_bytes=limit,
        ),
        cost_estimate=cost,
    )(q, k, v)

    if needs_mask:
        out = out[:, :, :T, :]
    return out


# ---------------------------------------------------------------------------
# Parameter prep (done ONCE) + full forward: QKV proj -> flash attn -> out proj
# ---------------------------------------------------------------------------
def prepare_params(params, *, num_heads: int, dtype=jnp.float32):
    """Build the fused (E, 3E) QKV weight with the 1/sqrt(D) query scaling folded
    in, cast to the compute dtype.  Call once, reuse across forward passes."""
    E = params["wq_t"].shape[0]
    D = E // num_heads
    assert D * num_heads == E
    scaling = float(D) ** -0.5
    wqkv_t = jnp.concatenate(
        [params["wq_t"] * scaling, params["wk_t"], params["wv_t"]], axis=1
    ).astype(dtype)
    bqkv = jnp.concatenate(
        [params["bq"] * scaling, params["bk"], params["bv"]], axis=1
    ).astype(dtype)
    return {
        "wqkv_t": wqkv_t, "bqkv": bqkv,
        "wo_t": params["wo_t"].astype(dtype), "bo": params["bo"].astype(dtype),
    }


def self_attention_pallas(hidden_states, prepared, *, num_heads: int,
                          block_q=512, block_kv=512, block_rows=256):
    """hidden_states: (B, T, E).  prepared: output of prepare_params().
    Compute dtype follows hidden_states.dtype; accumulation is f32 in-kernel."""
    B, T, E = hidden_states.shape
    H = num_heads
    D = E // H
    assert D * H == E

    x2d = hidden_states.reshape(B * T, E)
    qkv = _linear(x2d, prepared["wqkv_t"], prepared["bqkv"],
                  block_m=block_rows)                      # (B*T, 3E)

    # (B*T, 3E) -> (3, B, H, T, D): one fused XLA transpose covering q, k and v.
    # TODO(synk): feed the flash kernel straight from (B, T, 3, H, D) via BlockSpecs
    # fixing axis 2 and emit a lane-dense (B, T, H*D) output block to remove the
    # remaining wrapper-side HBM round trips.
    qkv5 = qkv.reshape(B, T, 3, H, D).transpose(2, 0, 3, 1, 4)
    attn = _flash_attention(qkv5[0], qkv5[1], qkv5[2],
                            block_q=block_q, block_kv=block_kv)   # (B, H, T, D)

    attn2d = attn.transpose(0, 2, 1, 3).reshape(B * T, E)
    out = _linear(attn2d, prepared["wo_t"], prepared["bo"], block_m=block_rows)
    return out.reshape(B, T, E)

    # TODO(synk): cross-attention (key_value_states), past_key_value cache,
    # attention_mask, layer_head_mask, dropout (training) and output_attentions
    # paths are not implemented (self-attention eval path only).


# ---------------------------------------------------------------------------
# Plain-JAX reference mirroring the PyTorch forward (exact f32 matmuls)
# ---------------------------------------------------------------------------
def _reference_self_attention(x, params, *, num_heads: int):
    B, T, E = x.shape
    D = E // num_heads
    scaling = float(D) ** -0.5
    hp = jax.lax.Precision.HIGHEST

    q = (jnp.einsum("bte,ef->btf", x, params["wq_t"], precision=hp)
         + params["bq"][0]) * scaling
    k = jnp.einsum("bte,ef->btf", x, params["wk_t"], precision=hp) + params["bk"][0]
    v = jnp.einsum("bte,ef->btf", x, params["wv_t"], precision=hp) + params["bv"][0]

    def shp(t):  # (B,T,E) -> (B*H, T, D)
        return t.reshape(B, T, num_heads, D).transpose(0, 2, 1, 3).reshape(
            B * num_heads, T, D)

    q, k, v = shp(q), shp(k), shp(v)
    w = jnp.einsum("btd,bsd->bts", q, k, precision=hp)
    w = jax.nn.softmax(w, axis=-1)
    o = jnp.einsum("bts,bsd->btd", w, v, precision=hp)
    o = o.reshape(B, num_heads, T, D).transpose(0, 2, 1, 3).reshape(B, T, E)
    return jnp.einsum("bte,ef->btf", o, params["wo_t"], precision=hp) + params["bo"][0]


def _init_params(key, embed_dim):
    """Deterministic synthetic parameters (shapes of nn.Linear(E, E, bias=True))."""
    keys = jax.random.split(key, 8)
    scale = 1.0 / float(embed_dim) ** 0.5

    def lin(kw, kb):
        w = jax.random.normal(kw, (embed_dim, embed_dim), jnp.float32) * scale
        b = jax.random.normal(kb, (embed_dim,), jnp.float32) * 0.02
        return w, b

    wq, bq = lin(keys[0], keys[1])
    wk, bk = lin(keys[2], keys[3])
    wv, bv = lin(keys[4], keys[5])
    wo, bo = lin(keys[6], keys[7])

    # Pre-transposed so kernels compute x @ W_t (== x @ W.T in torch convention).
    return {
        "wq_t": wq.T, "bq": bq.reshape(1, -1),
        "wk_t": wk.T, "bk": bk.reshape(1, -1),
        "wv_t": wv.T, "bv": bv.reshape(1, -1),
        "wo_t": wo.T, "bo": bo.reshape(1, -1),
    }


if __name__ == "__main__":
    # TPU's default matmul precision truncates f32 operands to bf16; force exact
    # f32 so the numerics check below is meaningful on any execution mode.
    for _prec in ("highest", "float32"):
        try:
            jax.config.update("jax_default_matmul_precision", _prec)
            break
        except Exception:
            pass

    B, T, E, H = 2, 8, 32, 4
    key = jax.random.PRNGKey(0)
    k_x, k_p = jax.random.split(key)
    x = jax.random.normal(k_x, (B, T, E), jnp.float32)
    params = _init_params(k_p, E)
    ref = _reference_self_attention(x, params, num_heads=H)

    # f32 path.
    prep32 = prepare_params(params, num_heads=H, dtype=jnp.float32)
    fwd32 = jax.jit(functools.partial(self_attention_pallas, num_heads=H))
    out = jax.block_until_ready(fwd32(x, prep32))
    assert out.shape == (B, T, E)
    diff = float(jnp.max(jnp.abs(out - ref)))
    # Tolerance leaves headroom for MXU f32 operand handling at E=32; genuine
    # semantic bugs (scaling/layout/softmax) produce O(0.1-1) errors.
    assert diff < 2e-2, f"f32 max abs diff {diff}"

    # bf16 path: bf16 MXU operands + bf16 exp, f32 accumulation in-kernel.
    prep16 = prepare_params(params, num_heads=H, dtype=jnp.bfloat16)
    fwd16 = jax.jit(functools.partial(self_attention_pallas, num_heads=H))
    out_bf = jax.block_until_ready(fwd16(x.astype(jnp.bfloat16), prep16))
    assert out_bf.dtype == jnp.bfloat16
    bf_diff = float(jnp.max(jnp.abs(out_bf.astype(jnp.float32) - ref)))
    assert bf_diff < 0.25, f"bf16 max abs diff {bf_diff}"

    print("KERNEL_OK")
</pallas_src>

<mosaic_0001>
module attributes {stable_mosaic.version = 11 : i64} {
  func.func @_linear_kernel(%arg0: i32, %arg1: i32, %arg2: i32, %arg3: memref<16x32xf32, #tpu.memory_space<vmem>>, %arg4: memref<32x96xf32, #tpu.memory_space<vmem>>, %arg5: memref<1x96xf32, #tpu.memory_space<vmem>>, %arg6: memref<16x96xf32, #tpu.memory_space<vmem>>, %arg7: memref<16x96xf32, #tpu.memory_space<vmem>>) attributes {dimension_semantics = [#tpu.dimension_semantics<parallel>, #tpu.dimension_semantics<parallel>, #tpu.dimension_semantics<arbitrary>], iteration_bounds = array<i64: 1, 1, 1>, scalar_prefetch = 0 : i64, scratch_operands = 1 : i64, tpu.core_type = #tpu.core_type<tc>, window_params = [{transform_indices = @transform_0, window_bounds = array<i64: 16, 32>}, {transform_indices = @transform_1, window_bounds = array<i64: 32, 96>}, {transform_indices = @transform_2, window_bounds = array<i64: 1, 96>}, {transform_indices = @transform_3, window_bounds = array<i64: 16, 96>}]} {
    %c0_i32 = arith.constant 0 : i32
    %0 = arith.cmpi eq, %arg2, %c0_i32 : i32
    %1 = arith.extui %0 : i1 to i32
    %c0_i32_0 = arith.constant 0 : i32
    %2 = arith.cmpi ne, %1, %c0_i32_0 : i32
    scf.if %2 {
      %cst_10 = arith.constant 0.000000e+00 : f32
      %12 = vector.broadcast %cst_10 : f32 to vector<16x96xf32>
      %c0_11 = arith.constant 0 : index
      %c0_12 = arith.constant 0 : index
      %13 = vector.load %arg7[%c0_11, %c0_12] : memref<16x96xf32, #tpu.memory_space<vmem>>, vector<16x96xf32>
      tpu.vector_store %arg7[%c0_11, %c0_12], %12 {strides = array<i32>} : memref<16x96xf32, #tpu.memory_space<vmem>>, vector<16x96xf32>,
    } else {
    }
    %c0 = arith.constant 0 : index
    %c0_1 = arith.constant 0 : index
    %3 = vector.load %arg7[%c0, %c0_1] : memref<16x96xf32, #tpu.memory_space<vmem>>, vector<16x96xf32>
    %c0_2 = arith.constant 0 : index
    %c0_3 = arith.constant 0 : index
    %4 = vector.load %arg3[%c0_2, %c0_3] : memref<16x32xf32, #tpu.memory_space<vmem>>, vector<16x32xf32>
    %c0_4 = arith.constant 0 : index
    %c0_5 = arith.constant 0 : index
    %5 = vector.load %arg4[%c0_4, %c0_5] : memref<32x96xf32, #tpu.memory_space<vmem>>, vector<32x96xf32>
    %cst = arith.constant dense<0.000000e+00> : vector<16x96xf32>
    %6 = tpu.matmul %4, %5, %cst {dimension_numbers = #tpu.dot_dimension_numbers<[1], [0], [0], [1], [0, 0, 1, 1], [], []>, precision = #tpu.contract_precision<fp32>} : vector<16x32xf32>, vector<32x96xf32>, vector<16x96xf32> -> vector<16x96xf32>
    %7 = arith.addf %3, %6 : vector<16x96xf32>
    %c0_6 = arith.constant 0 : index
    %c0_7 = arith.constant 0 : index
    %8 = vector.load %arg7[%c0_6, %c0_7] : memref<16x96xf32, #tpu.memory_space<vmem>>, vector<16x96xf32>
    tpu.vector_store %arg7[%c0_6, %c0_7], %7 {strides = array<i32>} : memref<16x96xf32, #tpu.memory_space<vmem>>, vector<16x96xf32>,
    %c0_i32_8 = arith.constant 0 : i32
    %9 = arith.cmpi eq, %arg2, %c0_i32_8 : i32
    %10 = arith.extui %9 : i1 to i32
    %c0_i32_9 = arith.constant 0 : i32
    %11 = arith.cmpi ne, %10, %c0_i32_9 : i32
    scf.if %11 {
      %c0_10 = arith.constant 0 : index
      %c0_11 = arith.constant 0 : index
      %12 = vector.load %arg7[%c0_10, %c0_11] : memref<16x96xf32, #tpu.memory_space<vmem>>, vector<16x96xf32>
      %c0_12 = arith.constant 0 : index
      %c0_13 = arith.constant 0 : index
      %13 = vector.load %arg5[%c0_12, %c0_13] : memref<1x96xf32, #tpu.memory_space<vmem>>, vector<1x96xf32>
      %14 = vector.broadcast %13 : vector<1x96xf32> to vector<16x96xf32>
      %15 = arith.addf %12, %14 : vector<16x96xf32>
      %c0_14 = arith.constant 0 : index
      %c0_15 = arith.constant 0 : index
      %16 = vector.load %arg6[%c0_14, %c0_15] : memref<16x96xf32, #tpu.memory_space<vmem>>, vector<16x96xf32>
      tpu.vector_store %arg6[%c0_14, %c0_15], %15 {strides = array<i32>} : memref<16x96xf32, #tpu.memory_space<vmem>>, vector<16x96xf32>,
    } else {
    }
    return
  }
  func.func @transform_0(%arg0: i32, %arg1: i32, %arg2: i32) -> (i32, i32) {
    %c0_i32 = arith.constant 0 : i32
    return %arg1, %arg2 : i32, i32
  }
  func.func @transform_1(%arg0: i32, %arg1: i32, %arg2: i32) -> (i32, i32) {
    %c0_i32 = arith.constant 0 : i32
    return %arg2, %arg0 : i32, i32
  }
  func.func @transform_2(%arg0: i32, %arg1: i32, %arg2: i32) -> (i32, i32) {
    %c0_i32 = arith.constant 0 : i32
    %c0_i32_0 = arith.constant 0 : i32
    return %c0_i32, %arg0 : i32, i32
  }
  func.func @transform_3(%arg0: i32, %arg1: i32, %arg2: i32) -> (i32, i32) {
    %c0_i32 = arith.constant 0 : i32
    return %arg1, %arg0 : i32, i32
  }
}

module attributes {stable_mosaic.version = 11 : i64} {
  func.func @kernel(%arg0: i32, %arg1: i32, %arg2: i32, %arg3: memref<1x4x8x8xf32, #tpu.memory_space<vmem>>, %arg4: memref<1x4x8x8xf32, #tpu.memory_space<vmem>>, %arg5: memref<1x4x8x8xf32, #tpu.memory_space<vmem>>, %arg6: memref<1x4x8x8xf32, #tpu.memory_space<vmem>>, %arg7: memref<4x8x1xf32, #tpu.memory_space<vmem>>, %arg8: memref<4x8x1xf32, #tpu.memory_space<vmem>>, %arg9: memref<4x8x8xf32, #tpu.memory_space<vmem>>) attributes {dimension_semantics = [#tpu.dimension_semantics<parallel>, #tpu.dimension_semantics<parallel>, #tpu.dimension_semantics<arbitrary>], iteration_bounds = array<i64: 2, 1, 1>, scalar_prefetch = 0 : i64, scratch_operands = 3 : i64, tpu.core_type = #tpu.core_type<tc>, window_params = [{transform_indices = @transform_0, window_bounds = array<i64: 1, 4, 8, 8>}, {transform_indices = @transform_1, window_bounds = array<i64: 1, 4, 8, 8>}, {transform_indices = @transform_2, window_bounds = array<i64: 1, 4, 8, 8>}, {transform_indices = @transform_3, window_bounds = array<i64: 1, 4, 8, 8>}]} {
    %c0_i32 = arith.constant 0 : i32
    %0 = arith.cmpi eq, %arg2, %c0_i32 : i32
    %1 = arith.extui %0 : i1 to i32
    %c0_i32_0 = arith.constant 0 : i32
    %2 = arith.cmpi ne, %1, %c0_i32_0 : i32
    scf.if %2 {
      %cst_35 = arith.constant 0xFF800000 : f32
      %35 = vector.broadcast %cst_35 : f32 to vector<4x8x1xf32>
      %c0_36 = arith.constant 0 : index
      %c0_37 = arith.constant 0 : index
      %c0_38 = arith.constant 0 : index
      %36 = vector.load %arg7[%c0_36, %c0_37, %c0_38] : memref<4x8x1xf32, #tpu.memory_space<vmem>>, vector<4x8x1xf32>
      tpu.vector_store %arg7[%c0_36, %c0_37, %c0_38], %35 {strides = array<i32>} : memref<4x8x1xf32, #tpu.memory_space<vmem>>, vector<4x8x1xf32>,
      %cst_39 = arith.constant 0.000000e+00 : f32
      %37 = vector.broadcast %cst_39 : f32 to vector<4x8x1xf32>
      %c0_40 = arith.constant 0 : index
      %c0_41 = arith.constant 0 : index
      %c0_42 = arith.constant 0 : index
      %38 = vector.load %arg8[%c0_40, %c0_41, %c0_42] : memref<4x8x1xf32, #tpu.memory_space<vmem>>, vector<4x8x1xf32>
      tpu.vector_store %arg8[%c0_40, %c0_41, %c0_42], %37 {strides = array<i32>} : memref<4x8x1xf32, #tpu.memory_space<vmem>>, vector<4x8x1xf32>,
      %cst_43 = arith.constant 0.000000e+00 : f32
      %39 = vector.broadcast %cst_43 : f32 to vector<4x8x8xf32>
      %c0_44 = arith.constant 0 : index
      %c0_45 = arith.constant 0 : index
      %c0_46 = arith.constant 0 : index
      %40 = vector.load %arg9[%c0_44, %c0_45, %c0_46] : memref<4x8x8xf32, #tpu.memory_space<vmem>>, vector<4x8x8xf32>
      tpu.vector_store %arg9[%c0_44, %c0_45, %c0_46], %39 {strides = array<i32>} : memref<4x8x8xf32, #tpu.memory_space<vmem>>, vector<4x8x8xf32>,
    } else {
    }
    %c0 = arith.constant 0 : index
    %c0_1 = arith.constant 0 : index
    %c0_2 = arith.constant 0 : index
    %c0_3 = arith.constant 0 : index
    %3 = vector.load %arg3[%c0, %c0_1, %c0_2, %c0_3] : memref<1x4x8x8xf32, #tpu.memory_space<vmem>>, vector<1x4x8x8xf32>
    %4 = vector.shape_cast %3 : vector<1x4x8x8xf32> to vector<4x8x8xf32>
    %c0_4 = arith.constant 0 : index
    %c0_5 = arith.constant 0 : index
    %c0_6 = arith.constant 0 : index
    %c0_7 = arith.constant 0 : index
    %5 = vector.load %arg4[%c0_4, %c0_5, %c0_6, %c0_7] : memref<1x4x8x8xf32, #tpu.memory_space<vmem>>, vector<1x4x8x8xf32>
    %6 = vector.shape_cast %5 : vector<1x4x8x8xf32> to vector<4x8x8xf32>
    %c0_8 = arith.constant 0 : index
    %c0_9 = arith.constant 0 : index
    %c0_10 = arith.constant 0 : index
    %c0_11 = arith.constant 0 : index
    %7 = vector.load %arg5[%c0_8, %c0_9, %c0_10, %c0_11] : memref<1x4x8x8xf32, #tpu.memory_space<vmem>>, vector<1x4x8x8xf32>
    %8 = vector.shape_cast %7 : vector<1x4x8x8xf32> to vector<4x8x8xf32>
    "tpu.trace_start"() <{level = 10 : i32, message = "hqd,hkd->hqk"}> : () -> ()
    %cst = arith.constant dense<0.000000e+00> : vector<4x8x8xf32>
    %9 = tpu.matmul %4, %6, %cst {dimension_numbers = #tpu.dot_dimension_numbers<[2], [2], [1], [1], [0, 0, 0, 1, 1, 1], [0], [0]>, precision = #tpu.contract_precision<fp32>} : vector<4x8x8xf32>, vector<4x8x8xf32>, vector<4x8x8xf32> -> vector<4x8x8xf32>
    "tpu.trace_stop"() : () -> ()
    %c0_12 = arith.constant 0 : index
    %c0_13 = arith.constant 0 : index
    %c0_14 = arith.constant 0 : index
    %10 = vector.load %arg7[%c0_12, %c0_13, %c0_14] : memref<4x8x1xf32, #tpu.memory_space<vmem>>, vector<4x8x1xf32>
    %cst_15 = arith.constant dense<0xFF800000> : vector<4x8xf32>
    %11 = vector.multi_reduction <maximumf>, %9, %cst_15 [2] : vector<4x8x8xf32> to vector<4x8xf32>
    %12 = vector.shape_cast %11 : vector<4x8xf32> to vector<4x8x1xf32>
    %13 = arith.maximumf %10, %12 : vector<4x8x1xf32>
    %14 = arith.subf %10, %13 : vector<4x8x1xf32>
    %15 = math.exp %14 : vector<4x8x1xf32>
    %16 = vector.broadcast %13 : vector<4x8x1xf32> to vector<4x8x8xf32>
    %17 = arith.subf %9, %16 : vector<4x8x8xf32>
    %18 = math.exp %17 : vector<4x8x8xf32>
    %c0_16 = arith.constant 0 : index
    %c0_17 = arith.constant 0 : index
    %c0_18 = arith.constant 0 : index
    %19 = vector.load %arg8[%c0_16, %c0_17, %c0_18] : memref<4x8x1xf32, #tpu.memory_space<vmem>>, vector<4x8x1xf32>
    %20 = arith.mulf %15, %19 : vector<4x8x1xf32>
    %cst_19 = arith.constant dense<0.000000e+00> : vector<4x8xf32>
    %21 = vector.multi_reduction <add>, %18, %cst_19 [2] : vector<4x8x8xf32> to vector<4x8xf32>
    %22 = vector.shape_cast %21 : vector<4x8xf32> to vector<4x8x1xf32>
    %23 = arith.addf %20, %22 : vector<4x8x1xf32>
    %c0_20 = arith.constant 0 : index
    %c0_21 = arith.constant 0 : index
    %c0_22 = arith.constant 0 : index
    %24 = vector.load %arg8[%c0_20, %c0_21, %c0_22] : memref<4x8x1xf32, #tpu.memory_space<vmem>>, vector<4x8x1xf32>
    tpu.vector_store %arg8[%c0_20, %c0_21, %c0_22], %23 {strides = array<i32>} : memref<4x8x1xf32, #tpu.memory_space<vmem>>, vector<4x8x1xf32>,
    %c0_23 = arith.constant 0 : index
    %c0_24 = arith.constant 0 : index
    %c0_25 = arith.constant 0 : index
    %25 = vector.load %arg9[%c0_23, %c0_24, %c0_25] : memref<4x8x8xf32, #tpu.memory_space<vmem>>, vector<4x8x8xf32>
    %26 = vector.broadcast %15 : vector<4x8x1xf32> to vector<4x8x8xf32>
    %27 = arith.mulf %26, %25 : vector<4x8x8xf32>
    "tpu.trace_start"() <{level = 10 : i32, message = "hqk,hkd->hqd"}> : () -> ()
    %cst_26 = arith.constant dense<0.000000e+00> : vector<4x8x8xf32>
    %28 = tpu.matmul %18, %8, %cst_26 {dimension_numbers = #tpu.dot_dimension_numbers<[2], [1], [1], [2], [0, 0, 0, 1, 1, 2], [0], [0]>, precision = #tpu.contract_precision<fp32>} : vector<4x8x8xf32>, vector<4x8x8xf32>, vector<4x8x8xf32> -> vector<4x8x8xf32>
    "tpu.trace_stop"() : () -> ()
    %29 = arith.addf %27, %28 : vector<4x8x8xf32>
    %c0_27 = arith.constant 0 : index
    %c0_28 = arith.constant 0 : index
    %c0_29 = arith.constant 0 : index
    %30 = vector.load %arg9[%c0_27, %c0_28, %c0_29] : memref<4x8x8xf32, #tpu.memory_space<vmem>>, vector<4x8x8xf32>
    tpu.vector_store %arg9[%c0_27, %c0_28, %c0_29], %29 {strides = array<i32>} : memref<4x8x8xf32, #tpu.memory_space<vmem>>, vector<4x8x8xf32>,
    %c0_30 = arith.constant 0 : index
    %c0_31 = arith.constant 0 : index
    %c0_32 = arith.constant 0 : index
    %31 = vector.load %arg7[%c0_30, %c0_31, %c0_32] : memref<4x8x1xf32, #tpu.memory_space<vmem>>, vector<4x8x1xf32>
    tpu.vector_store %arg7[%c0_30, %c0_31, %c0_32], %13 {strides = array<i32>} : memref<4x8x1xf32, #tpu.memory_space<vmem>>, vector<4x8x1xf32>,
    %c0_i32_33 = arith.constant 0 : i32
    %32 = arith.cmpi eq, %arg2, %c0_i32_33 : i32
    %33 = arith.extui %32 : i1 to i32
    %c0_i32_34 = arith.constant 0 : i32
    %34 = arith.cmpi ne, %33, %c0_i32_34 : i32
    scf.if %34 {
      %c0_35 = arith.constant 0 : index
      %c0_36 = arith.constant 0 : index
      %c0_37 = arith.constant 0 : index
      %35 = vector.load %arg8[%c0_35, %c0_36, %c0_37] : memref<4x8x1xf32, #tpu.memory_space<vmem>>, vector<4x8x1xf32>
      %cst_38 = arith.constant 1.000000e+00 : f32
      %36 = vector.broadcast %cst_38 : f32 to vector<4x8x1xf32>
      %37 = arith.divf %36, %35 : vector<4x8x1xf32>
      %c0_39 = arith.constant 0 : index
      %c0_40 = arith.constant 0 : index
      %c0_41 = arith.constant 0 : index
      %38 = vector.load %arg9[%c0_39, %c0_40, %c0_41] : memref<4x8x8xf32, #tpu.memory_space<vmem>>, vector<4x8x8xf32>
      %39 = vector.broadcast %37 : vector<4x8x1xf32> to vector<4x8x8xf32>
      %40 = arith.mulf %38, %39 : vector<4x8x8xf32>
      %c0_42 = arith.constant 0 : index
      %c0_43 = arith.constant 0 : index
      %c0_44 = arith.constant 0 : index
      %c0_45 = arith.constant 0 : index
      %41 = vector.load %arg6[%c0_42, %c0_43, %c0_44, %c0_45] : memref<1x4x8x8xf32, #tpu.memory_space<vmem>>, vector<1x4x8x8xf32>
      %42 = vector.shape_cast %41 : vector<1x4x8x8xf32> to vector<4x8x8xf32>
      %43 = vector.shape_cast %40 : vector<4x8x8xf32> to vector<1x4x8x8xf32>
      tpu.vector_store %arg6[%c0_42, %c0_43, %c0_44, %c0_45], %43 {strides = array<i32>} : memref<1x4x8x8xf32, #tpu.memory_space<vmem>>, vector<1x4x8x8xf32>,
    } else {
    }
    return
  }
  func.func @transform_0(%arg0: i32, %arg1: i32, %arg2: i32) -> (i32, i32, i32, i32) {
    %c0_i32 = arith.constant 0 : i32
    %c0_i32_0 = arith.constant 0 : i32
    %c0_i32_1 = arith.constant 0 : i32
    return %arg0, %c0_i32, %arg1, %c0_i32_0 : i32, i32, i32, i32
  }
  func.func @transform_1(%arg0: i32, %arg1: i32, %arg2: i32) -> (i32, i32, i32, i32) {
    %c0_i32 = arith.constant 0 : i32
    %c0_i32_0 = arith.constant 0 : i32
    %c0_i32_1 = arith.constant 0 : i32
    return %arg0, %c0_i32, %arg2, %c0_i32_0 : i32, i32, i32, i32
  }
  func.func @transform_2(%arg0: i32, %arg1: i32, %arg2: i32) -> (i32, i32, i32, i32) {
    %c0_i32 = arith.constant 0 : i32
    %c0_i32_0 = arith.constant 0 : i32
    %c0_i32_1 = arith.constant 0 : i32
    return %arg0, %c0_i32, %arg2, %c0_i32_0 : i32, i32, i32, i32
  }
  func.func @transform_3(%arg0: i32, %arg1: i32, %arg2: i32) -> (i32, i32, i32, i32) {
    %c0_i32 = arith.constant 0 : i32
    %c0_i32_0 = arith.constant 0 : i32
    %c0_i32_1 = arith.constant 0 : i32
    return %arg0, %c0_i32, %arg1, %c0_i32_0 : i32, i32, i32, i32
  }
}

module attributes {stable_mosaic.version = 11 : i64} {
  func.func @_linear_kernel(%arg0: i32, %arg1: i32, %arg2: i32, %arg3: memref<16x32xf32, #tpu.memory_space<vmem>>, %arg4: memref<32x32xf32, #tpu.memory_space<vmem>>, %arg5: memref<1x32xf32, #tpu.memory_space<vmem>>, %arg6: memref<16x32xf32, #tpu.memory_space<vmem>>, %arg7: memref<16x32xf32, #tpu.memory_space<vmem>>) attributes {dimension_semantics = [#tpu.dimension_semantics<parallel>, #tpu.dimension_semantics<parallel>, #tpu.dimension_semantics<arbitrary>], iteration_bounds = array<i64: 1, 1, 1>, scalar_prefetch = 0 : i64, scratch_operands = 1 : i64, tpu.core_type = #tpu.core_type<tc>, window_params = [{transform_indices = @transform_0, window_bounds = array<i64: 16, 32>}, {transform_indices = @transform_1, window_bounds = array<i64: 32, 32>}, {transform_indices = @transform_2, window_bounds = array<i64: 1, 32>}, {transform_indices = @transform_3, window_bounds = array<i64: 16, 32>}]} {
    %c0_i32 = arith.constant 0 : i32
    %0 = arith.cmpi eq, %arg2, %c0_i32 : i32
    %1 = arith.extui %0 : i1 to i32
    %c0_i32_0 = arith.constant 0 : i32
    %2 = arith.cmpi ne, %1, %c0_i32_0 : i32
    scf.if %2 {
      %cst_10 = arith.constant 0.000000e+00 : f32
      %12 = vector.broadcast %cst_10 : f32 to vector<16x32xf32>
      %c0_11 = arith.constant 0 : index
      %c0_12 = arith.constant 0 : index
      %13 = vector.load %arg7[%c0_11, %c0_12] : memref<16x32xf32, #tpu.memory_space<vmem>>, vector<16x32xf32>
      tpu.vector_store %arg7[%c0_11, %c0_12], %12 {strides = array<i32>} : memref<16x32xf32, #tpu.memory_space<vmem>>, vector<16x32xf32>,
    } else {
    }
    %c0 = arith.constant 0 : index
    %c0_1 = arith.constant 0 : index
    %3 = vector.load %arg7[%c0, %c0_1] : memref<16x32xf32, #tpu.memory_space<vmem>>, vector<16x32xf32>
    %c0_2 = arith.constant 0 : index
    %c0_3 = arith.constant 0 : index
    %4 = vector.load %arg3[%c0_2, %c0_3] : memref<16x32xf32, #tpu.memory_space<vmem>>, vector<16x32xf32>
    %c0_4 = arith.constant 0 : index
    %c0_5 = arith.constant 0 : index
    %5 = vector.load %arg4[%c0_4, %c0_5] : memref<32x32xf32, #tpu.memory_space<vmem>>, vector<32x32xf32>
    %cst = arith.constant dense<0.000000e+00> : vector<16x32xf32>
    %6 = tpu.matmul %4, %5, %cst {dimension_numbers = #tpu.dot_dimension_numbers<[1], [0], [0], [1], [0, 0, 1, 1], [], []>, precision = #tpu.contract_precision<fp32>} : vector<16x32xf32>, vector<32x32xf32>, vector<16x32xf32> -> vector<16x32xf32>
    %7 = arith.addf %3, %6 : vector<16x32xf32>
    %c0_6 = arith.constant 0 : index
    %c0_7 = arith.constant 0 : index
    %8 = vector.load %arg7[%c0_6, %c0_7] : memref<16x32xf32, #tpu.memory_space<vmem>>, vector<16x32xf32>
    tpu.vector_store %arg7[%c0_6, %c0_7], %7 {strides = array<i32>} : memref<16x32xf32, #tpu.memory_space<vmem>>, vector<16x32xf32>,
    %c0_i32_8 = arith.constant 0 : i32
    %9 = arith.cmpi eq, %arg2, %c0_i32_8 : i32
    %10 = arith.extui %9 : i1 to i32
    %c0_i32_9 = arith.constant 0 : i32
    %11 = arith.cmpi ne, %10, %c0_i32_9 : i32
    scf.if %11 {
      %c0_10 = arith.constant 0 : index
      %c0_11 = arith.constant 0 : index
      %12 = vector.load %arg7[%c0_10, %c0_11] : memref<16x32xf32, #tpu.memory_space<vmem>>, vector<16x32xf32>
      %c0_12 = arith.constant 0 : index
      %c0_13 = arith.constant 0 : index
      %13 = vector.load %arg5[%c0_12, %c0_13] : memref<1x32xf32, #tpu.memory_space<vmem>>, vector<1x32xf32>
      %14 = vector.broadcast %13 : vector<1x32xf32> to vector<16x32xf32>
      %15 = arith.addf %12, %14 : vector<16x32xf32>
      %c0_14 = arith.constant 0 : index
      %c0_15 = arith.constant 0 : index
      %16 = vector.load %arg6[%c0_14, %c0_15] : memref<16x32xf32, #tpu.memory_space<vmem>>, vector<16x32xf32>
      tpu.vector_store %arg6[%c0_14, %c0_15], %15 {strides = array<i32>} : memref<16x32xf32, #tpu.memory_space<vmem>>, vector<16x32xf32>,
    } else {
    }
    return
  }
  func.func @transform_0(%arg0: i32, %arg1: i32, %arg2: i32) -> (i32, i32) {
    %c0_i32 = arith.constant 0 : i32
    return %arg1, %arg2 : i32, i32
  }
  func.func @transform_1(%arg0: i32, %arg1: i32, %arg2: i32) -> (i32, i32) {
    %c0_i32 = arith.constant 0 : i32
    return %arg2, %arg0 : i32, i32
  }
  func.func @transform_2(%arg0: i32, %arg1: i32, %arg2: i32) -> (i32, i32) {
    %c0_i32 = arith.constant 0 : i32
    %c0_i32_0 = arith.constant 0 : i32
    return %c0_i32, %arg0 : i32, i32
  }
  func.func @transform_3(%arg0: i32, %arg1: i32, %arg2: i32) -> (i32, i32) {
    %c0_i32 = arith.constant 0 : i32
    return %arg1, %arg0 : i32, i32
  }
}

</mosaic_0001>

<bundles_post_ra>
// kernel: self_attention_pallas.3
= control target key start
LH: loop header
LB: loop body
LE: loop exit
PB: predicated region body
PF: predicated region fallthrough
CT: control target
= control target key end

     0   :  { %8 = vsyncpa [#allocation4], 0  ;;  %s865_s0 = inlined_call_operand.hbm [shape: f32[16,32], index: 0, kind: input, shape index: {}]   ;;  %s866_s1 = inlined_call_operand.hbm [shape: f32[32,96], index: 1, kind: input, shape index: {}]   ;;  %s867_s2 = inlined_call_operand.vmem [shape: f32[1,96], index: 2, kind: input, shape index: {}]   ;;  %s868_s3 = inlined_call_operand.vmem [shape: f32[16,96], index: 3, kind: output, shape index: {}]  }
   0x1   :  { %9 = vsyncpa [#allocation6], 0  ;;  %s771_s12 = smov [#allocation3]  }
   0x2   :  { %s15_s13 = sshll.u32 %s771_s12, 4  ;;  %s16_s13 = int_to_ptr.vmem [resolvable:$true] %s15_s13 }
   0x3   :  { %s735_s14 = scalar_lea.vmem %s16_s13, 256  ;;  %p740_p1 = scmp.lt.s32.totalorder %s16_s13, %s16_s13 }
   0x4   :  { %p736_p0 = scmp.ne.s32.totalorder %s16_s13, %s735_s14  ;;  %p741_p2 = scmp.lt.s32.totalorder %s735_s14, %s735_s14 }
   0x6   :  { %p742_p3 = por %p741_p2, %p740_p1 }
   0x8   :  { %p743_p4 = pnand %p742_p3, %p736_p0 }
   0xa   :  { %746 = shalt.err (!%p743_p4)
}
   0xb   :  { %s772_s15 = smov 128   ;;  %s773_s16 = smov 8  }
   0xc   :  { %21 = dma.hbm_to_vmem [thread:$0]  %s865_s0, 256, %s16_s13, [#allocation4], %s772_s15, %s772_s15, %s773_s16  }
   0xd   :  { %s774_s19 = smov [#allocation5]  }
   0xe   :  { %s27_s20 = sshll.u32 %s774_s19, 4  ;;  %s28_s20 = int_to_ptr.vmem [resolvable:$true] %s27_s20 }
   0xf   :  { %s755_s21 = scalar_lea.vmem %s28_s20, 512  ;;  %p760_p6 = scmp.lt.s32.totalorder %s28_s20, %s28_s20 }
  0x10   :  { %p756_p5 = scmp.ne.s32.totalorder %s28_s20, %s755_s21  ;;  %p761_p7 = scmp.lt.s32.totalorder %s755_s21, %s755_s21 }
  0x12   :  { %p762_p8 = por %p761_p7, %p760_p6 }
  0x14   :  { %p763_p9 = pnand %p762_p8, %p756_p5 }
  0x16   :  { %766 = shalt.err (!%p763_p9)
}
  0x17   :  { %33 = dma.hbm_to_vmem [thread:$0]  %s866_s1, 512, %s28_s20, [#allocation6], %s772_s15, %s772_s15, %s773_s16  }
  0x18   :  { %767 = dma.done.wait [#allocation4], 256  }
  0x19   :  { %768 = vsyncadd [#allocation4], 4294967040 }
  0x1a   :  { %769 = dma.done.wait [#allocation6], 512  }
  0x1b   :  { %770 = vsyncadd [#allocation6], 4294966784  ;;  %vm57_vm0 = vcmask 261120   ;;  %v56_v0 = vld [vmem:[#allocation5 + $0x18] sm:$0xff]  ;;  %v55_v1 = vld [vmem:[#allocation5 + $0x10] sm:$0xff]  ;;  %vm46_vm1 = vcmask 785408  }
  0x1c   :  { %v54_v2 = vld [vmem:[#allocation5 + $0x8] sm:$0xff]  ;;  %v802_v3 = vand.u32 4294901760, %v56_v0  ;;  %v804_v4 = vand.u32 4294901760, %v55_v1  ;;  %v53_v6 = vld [vmem:[#allocation5] sm:$0xff]  ;;  %v51_v7 = vld [vmem:[#allocation3] sm:$0xff]  ;;  %v775_v38 = vmov 0.0  }
  0x1d   :  { %v806_v5 = vand.u32 4294901760, %v54_v2  ;;  %v52_v8 = vld [vmem:[#allocation3 + $0x8] sm:$0xff]  ;;  %v808_v9 = vand.u32 4294901760, %v53_v6  ;;  %v59_v10 = vsel %vm57_vm0, %v51_v7, 0  ;;  %48 = vst.msk [vmem:[#allocation2 + $0x8] sm:$0xff] %vm46_vm1, %v775_v38  ;;  %47 = vst.msk [vmem:[#allocation2] sm:$0xff] %vm46_vm1, %v775_v38 }
  0x1e   :  { %v62_v11 = vsel %vm57_vm0, %v52_v8, 0  ;;  %656 = vmatprep.subr.mxu0 %v802_v3  ;;  %v179_v12 = vsub.f32 %v56_v0, %v802_v3  ;;  %v812_v13 = vand.u32 4294901760, %v59_v10  ;;  %v186_v15 = vsub.f32 %v55_v1, %v804_v4  ;;  %v619_v1 = vld [vmem:[%s867_s2] ss:$0 sm:$0xff] }
  0x1f   :  { %v814_v14 = vand.u32 4294901760, %v62_v11  ;;  %657 = vmatpush3.msra.mxu0 %v802_v3  ;;  %v193_v16 = vsub.f32 %v54_v2, %v806_v5  ;;  %v200_v17 = vsub.f32 %v53_v6, %v808_v9 }
  0x20   :  { %658 = vmatprep.subr.mxu0 %v804_v4  ;;  %v180_v18 = vand.u32 4294901760, %v179_v12  ;;  %v134_v19 = vsub.f32 %v59_v10, %v812_v13  ;;  %v187_v20 = vand.u32 4294901760, %v186_v15  ;;  %675 = vmatprep.mubr.f32.mxu1 %v812_v13 }
  0x21   :  { %v144_v21 = vsub.f32 %v62_v11, %v814_v14  ;;  %659 = vmatpush3.msra.mxu0 %v804_v4  ;;  %v194_v22 = vand.u32 4294901760, %v193_v16  ;;  %v201_v23 = vand.u32 4294901760, %v200_v17 }
  0x22   :  { %660 = vmatprep.subr.mxu0 %v806_v5  ;;  %v181_v24 = vsub.f32 %v179_v12, %v180_v18  ;;  %v135_v25 = vand.u32 4294901760, %v134_v19  ;;  %v188_v26 = vsub.f32 %v186_v15, %v187_v20 }
  0x23   :  { %v145_v27 = vand.u32 4294901760, %v144_v21  ;;  %661 = vmatpush3.msra.mxu0 %v806_v5  ;;  %v195_v28 = vsub.f32 %v193_v16, %v194_v22  ;;  %v202_v29 = vsub.f32 %v200_v17, %v201_v23 }
  0x24   :  { %662 = vmatprep.subr.mxu0 %v808_v9  ;;  %v182_v30 = vand.u32 4294901760, %v181_v24  ;;  %v136_v31 = vsub.f32 %v134_v19, %v135_v25  ;;  %v189_v32 = vand.u32 4294901760, %v188_v26  ;;  %v50_v56 = vld [vmem:[#allocation2 + $0x8] sm:$0xff]  ;;  %v49_v60 = vld [vmem:[#allocation2] sm:$0xff] }
  0x25   :  { %v146_v33 = vsub.f32 %v144_v21, %v145_v27  ;;  %663 = vmatpush3.msra.mxu0 %v808_v9  ;;  %v196_v36 = vand.u32 4294901760, %v195_v28  ;;  %v203_v37 = vand.u32 4294901760, %v202_v29 }
  0x26   :  { %667 = vmatprep.subr.mxu1 %v182_v30  ;;  %v137_v34 = vand.u32 4294901760, %v136_v31  ;;  %678 = vmatprep.subr.mxu0 %v179_v12 }
  0x27   :  { %v147_v35 = vand.u32 4294901760, %v146_v33  ;;  %668 = vmatpush3.msra.mxu1 %v182_v30 }
  0x28   :  { %664 = vmatprep.mubr.f32.mxu0 %v137_v34  ;;  %669 = vmatprep.subr.mxu1 %v189_v32 }
  0x29   :  { %665 = vmatmul.mubr.f32.vlgmr.msra.gmra.mxu0 %v147_v35  ;;  %670 = vmatpush3.msra.mxu1 %v189_v32 }
  0x2a   :  { %679 = vmatpush3.msra.mxu0 %v179_v12  ;;  %671 = vmatprep.subr.mxu1 %v196_v36 }
  0x2b   :  { %680 = vmatprep.subr.mxu0 %v186_v15  ;;  %672 = vmatpush3.msra.mxu1 %v196_v36 }
  0x2c   :  { %681 = vmatpush3.msra.mxu0 %v186_v15  ;;  %673 = vmatprep.subr.mxu1 %v203_v37 }
  0x2d   :  { %682 = vmatprep.subr.mxu0 %v193_v16  ;;  %674 = vmatpush3.msra.mxu1 %v203_v37 }
  0x2e   :  { %683 = vmatpush3.msra.mxu0 %v193_v16  ;;  %676 = vmatmul.mubr.f32.vlgmr.msra.gmra.mxu1 %v814_v14 }
  0x2f   :  { %684 = vmatprep.subr.mxu0 %v200_v17  ;;  %689 = vmatprep.subr.mxu1 %v802_v3 }
  0x30   :  { %685 = vmatpush3.msra.mxu0 %v200_v17  ;;  %686 = vmatprep.mubr.f32.mxu0 %v134_v19 }
  0x31   :  { %690 = vmatpush3.msra.mxu1 %v802_v3  ;;  %687 = vmatmul.mubr.f32.vlgmr.msra.gmra.mxu0 %v144_v21 }
  0x32   :  { %691 = vmatprep.subr.mxu1 %v804_v4  ;;  %700 = vmatprep.subr.mxu0 %v180_v18 }
  0x33   :  { %692 = vmatpush3.msra.mxu1 %v804_v4  ;;  %701 = vmatpush3.msra.mxu0 %v180_v18 }
  0x34   :  { %693 = vmatprep.subr.mxu1 %v806_v5  ;;  %702 = vmatprep.subr.mxu0 %v187_v20 }
  0x35   :  { %694 = vmatpush3.msra.mxu1 %v806_v5  ;;  %703 = vmatpush3.msra.mxu0 %v187_v20 }
  0x36   :  { %695 = vmatprep.subr.mxu1 %v808_v9  ;;  %704 = vmatprep.subr.mxu0 %v194_v22 }
  0x37   :  { %696 = vmatpush3.msra.mxu1 %v808_v9  ;;  %697 = vmatprep.mubr.f32.mxu1 %v135_v25 }
  0x38   :  { %705 = vmatpush3.msra.mxu0 %v194_v22  ;;  %698 = vmatmul.mubr.f32.vlgmr.msra.gmra.mxu1 %v145_v27 }
  0x39   :  { %706 = vmatprep.subr.mxu0 %v201_v23  ;;  %711 = vmatprep.subr.mxu1 %v802_v3 }
  0x3a   :  { %707 = vmatpush3.msra.mxu0 %v201_v23  ;;  %708 = vmatprep.mubr.f32.mxu0 %v812_v13 }
  0x3b   :  { %712 = vmatpush3.msra.mxu1 %v802_v3  ;;  %709 = vmatmul.mubr.f32.vlgmr.msra.gmra.mxu0 %v814_v14 }
  0x3c   :  { %713 = vmatprep.subr.mxu1 %v804_v4  ;;  %719 = vmatprep.mubr.f32.mxu1 %v812_v13 }
  0x3d   :  { %714 = vmatpush3.msra.mxu1 %v804_v4 }
  0x3e   :  { %715 = vmatprep.subr.mxu1 %v806_v5 }
  0x3f   :  { %716 = vmatpush3.msra.mxu1 %v806_v5 }
  0x40   :  { %717 = vmatprep.subr.mxu1 %v808_v9 }
  0x41   :  { %718 = vmatpush3.msra.mxu1 %v808_v9 }
  0x42   :  { %720 = vmatmul.mubr.f32.vlgmr.msra.gmra.mxu1 %v814_v14 }
  0xe9   :  { %v666_v39 = vpop.f32.mrf.mxu0 }
  0xeb   :  { %v139_v40 = vpop.f32.mrf.mxu0 }
  0xee   :  { %v677_v41 = vpop.f32.mrf.mxu1 }
  0xef   :  { %v247_v44 = vadd.f32 %v677_v41, %v666_v39 }
  0xf0   :  { %v240_v42 = vpop.f32.mrf.mxu1 }
  0xf1   :  { %v688_v43 = vpop.f32.mrf.mxu0  ;;  %v241_v46 = vadd.f32 %v240_v42, %v139_v40 }
  0xf2   :  { %v334_v48 = vadd.f32 %v688_v43, %v247_v44 }
  0xf3   :  { %v326_v47 = vpop.f32.mrf.mxu0 }
  0xf4   :  { %v327_v51 = vadd.f32 %v326_v47, %v241_v46 }
  0xf8   :  { %v699_v45 = vpop.f32.mrf.mxu1 }
  0xf9   :  { %v419_v52 = vadd.f32 %v699_v45, %v334_v48 }
  0xfa   :  { %v410_v49 = vpop.f32.mrf.mxu1 }
  0xfb   :  { %v710_v50 = vpop.f32.mrf.mxu0  ;;  %v411_v53 = vadd.f32 %v410_v49, %v327_v51 }
  0xfc   :  { %v508_v55 = vadd.f32 %v710_v50, %v419_v52 }
  0xfd   :  { %v501_v54 = vpop.f32.mrf.mxu0 }
  0xfe   :  { %v502_v58 = vadd.f32 %v501_v54, %v411_v53 }
 0x102   :  { %v721_v57 = vpop.f32.mrf.mxu1 }
 0x103   :  { %v589_v59 = vadd.f32 %v721_v57, %v508_v55 }
 0x104   :  { %v582_v61 = vpop.f32.mrf.mxu1 }
 0x105   :  { %v593_v62 = vadd.f32 %v589_v59, %v50_v56  ;;  %v583_v63 = vadd.f32 %v582_v61, %v502_v58 }
 0x107   :  { %596 = vst.msk [vmem:[#allocation2 + $0x8] sm:$0xff] %vm46_vm1, %v593_v62  ;;  %v592_v0 = vadd.f32 %v583_v63, %v49_v60 }
 0x109   :  { %595 = vst.msk [vmem:[#allocation2] sm:$0xff] %vm46_vm1, %v592_v0 }
 0x10e   :  { %v601_v2 = vld [vmem:[#allocation2 + $0x8] sm:$0xff] }
 0x10f   :  { %v610_v3 = vadd.f32 %v619_v1, %v601_v2 }
 0x110   :  { %v600_v4 = vld [vmem:[#allocation2] sm:$0xff] }
 0x111   :  { %612 = vst.msk [vmem:[%s868_s3 + $0x8] sm:$0xff] %vm46_vm1, %v610_v3  ;;  %v609_v5 = vadd.f32 %v619_v1, %v600_v4 }
 0x113   :  { %611 = vst.msk [vmem:[%s868_s3] sm:$0xff] %vm46_vm1, %v609_v5 }
 0x114   :  { %617 = vsyncpa [#allocation4], 1 }
 0x115   :  { %618 = vsyncpa [#allocation6], 1 }

// kernel: self_attention_pallas.5
= control target key start
LH: loop header
LB: loop body
LE: loop exit
PB: predicated region body
PF: predicated region fallthrough
CT: control target
= control target key end

     0   :  { %vm19_vm0 = vcmask 261120   ;;  %s834_s0 = inlined_call_operand.vmem [shape: f32[16,32], index: 0, kind: input, shape index: {}]   ;;  %s835_s1 = inlined_call_operand.vmem [shape: f32[32,32], index: 1, kind: input, shape index: {}]   ;;  %s836_s2 = inlined_call_operand.vmem [shape: f32[1,32], index: 2, kind: input, shape index: {}]   ;;  %s837_s3 = inlined_call_operand.hbm [shape: f32[16,32], index: 3, kind: output, shape index: {}]  }
   0x1   :  { %v29_v0 = vld [vmem:[%s835_s1 + $0x18] sm:$0xff]  ;;  %v28_v1 = vld [vmem:[%s835_s1 + $0x10] sm:$0xff]  ;;  %v27_v2 = vld [vmem:[%s835_s1 + $0x8] sm:$0xff] }
   0x2   :  { %v763_v3 = vand.u32 4294901760, %v29_v0  ;;  %v765_v4 = vand.u32 4294901760, %v28_v1  ;;  %v767_v5 = vand.u32 4294901760, %v27_v2  ;;  %v26_v6 = vld [vmem:[%s835_s1] sm:$0xff]  ;;  %v25_v8 = vld [vmem:[%s834_s0 + $0x8] sm:$0xff] }
   0x3   :  { %v24_v7 = vld [vmem:[%s834_s0] sm:$0xff]  ;;  %v778_v9 = vand.u32 4294901760, %v26_v6  ;;  %v35_v11 = vsel %vm19_vm0, %v25_v8, 0 }
   0x4   :  { %v32_v10 = vsel %vm19_vm0, %v24_v7, 0 }
   0x5   :  { %8 = vsyncpa [#allocation4], 0  ;;  %638 = vmatprep.subr.mxu0 %v763_v3  ;;  %v152_v12 = vsub.f32 %v29_v0, %v763_v3  ;;  %v784_v13 = vand.u32 4294901760, %v32_v10  ;;  %v159_v14 = vsub.f32 %v28_v1, %v765_v4  ;;  %v787_v15 = vand.u32 4294901760, %v35_v11  ;;  %v601_v1 = vld [vmem:[%s836_s2] ss:$0 sm:$0xff] }
   0x6   :  { %639 = vmatpush3.msra.mxu0 %v763_v3  ;;  %v166_v16 = vsub.f32 %v27_v2, %v767_v5  ;;  %v173_v17 = vsub.f32 %v26_v6, %v778_v9  ;;  %v730_v38 = vmov 0.0   ;;  %s731_s24 = smov [#allocation3]  }
   0x7   :  { %640 = vmatprep.subr.mxu0 %v765_v4  ;;  %v153_v18 = vand.u32 4294901760, %v152_v12  ;;  %v107_v19 = vsub.f32 %v32_v10, %v784_v13  ;;  %v160_v20 = vand.u32 4294901760, %v159_v14  ;;  %v117_v21 = vsub.f32 %v35_v11, %v787_v15  ;;  %657 = vmatprep.mubr.f32.mxu1 %v784_v13  ;;  %21 = vst.msk [vmem:[#allocation2 + $0x8] sm:$0xff] %vm19_vm0, %v730_v38  ;;  %s590_s25 = sshll.u32 %s731_s24, 4  ;;  %s591_s25 = int_to_ptr.vmem [resolvable:$true] %s590_s25 }
   0x8   :  { %641 = vmatpush3.msra.mxu0 %v765_v4  ;;  %v167_v22 = vand.u32 4294901760, %v166_v16  ;;  %v174_v23 = vand.u32 4294901760, %v173_v17  ;;  %20 = vst.msk [vmem:[#allocation2] sm:$0xff] %vm19_vm0, %v730_v38  ;;  %s708_s26 = scalar_lea.vmem %s591_s25, 256  ;;  %p713_p1 = scmp.lt.s32.totalorder %s591_s25, %s591_s25 }
   0x9   :  { %642 = vmatprep.subr.mxu0 %v767_v5  ;;  %v154_v24 = vsub.f32 %v152_v12, %v153_v18  ;;  %v108_v25 = vand.u32 4294901760, %v107_v19  ;;  %v161_v26 = vsub.f32 %v159_v14, %v160_v20  ;;  %v118_v27 = vand.u32 4294901760, %v117_v21  ;;  %p709_p0 = scmp.ne.s32.totalorder %s591_s25, %s708_s26  ;;  %p714_p2 = scmp.lt.s32.totalorder %s708_s26, %s708_s26 }
   0xa   :  { %643 = vmatpush3.msra.mxu0 %v767_v5  ;;  %v168_v28 = vsub.f32 %v166_v16, %v167_v22  ;;  %v175_v29 = vsub.f32 %v173_v17, %v174_v23 }
   0xb   :  { %644 = vmatprep.subr.mxu0 %v778_v9  ;;  %v155_v30 = vand.u32 4294901760, %v154_v24  ;;  %v109_v31 = vsub.f32 %v107_v19, %v108_v25  ;;  %v162_v32 = vand.u32 4294901760, %v161_v26  ;;  %v119_v33 = vsub.f32 %v117_v21, %v118_v27  ;;  %p715_p3 = por %p714_p2, %p713_p1 }
   0xc   :  { %645 = vmatpush3.msra.mxu0 %v778_v9  ;;  %v169_v36 = vand.u32 4294901760, %v168_v28  ;;  %v176_v37 = vand.u32 4294901760, %v175_v29 }
   0xd   :  { %649 = vmatprep.subr.mxu1 %v155_v30  ;;  %v110_v34 = vand.u32 4294901760, %v109_v31  ;;  %660 = vmatprep.subr.mxu0 %v152_v12  ;;  %v120_v35 = vand.u32 4294901760, %v119_v33  ;;  %p716_p4 = pnand %p715_p3, %p709_p0 }
   0xe   :  { %650 = vmatpush3.msra.mxu1 %v155_v30  ;;  %v23_v56 = vld [vmem:[#allocation2 + $0x8] sm:$0xff] }
   0xf   :  { %646 = vmatprep.mubr.f32.mxu0 %v110_v34  ;;  %651 = vmatprep.subr.mxu1 %v162_v32  ;;  %v22_v60 = vld [vmem:[#allocation2] sm:$0xff] }
  0x10   :  { %647 = vmatmul.mubr.f32.vlgmr.msra.gmra.mxu0 %v120_v35  ;;  %652 = vmatpush3.msra.mxu1 %v162_v32 }
  0x11   :  { %661 = vmatpush3.msra.mxu0 %v152_v12  ;;  %653 = vmatprep.subr.mxu1 %v169_v36 }
  0x12   :  { %662 = vmatprep.subr.mxu0 %v159_v14  ;;  %654 = vmatpush3.msra.mxu1 %v169_v36 }
  0x13   :  { %663 = vmatpush3.msra.mxu0 %v159_v14  ;;  %655 = vmatprep.subr.mxu1 %v176_v37 }
  0x14   :  { %664 = vmatprep.subr.mxu0 %v166_v16  ;;  %656 = vmatpush3.msra.mxu1 %v176_v37 }
  0x15   :  { %665 = vmatpush3.msra.mxu0 %v166_v16  ;;  %658 = vmatmul.mubr.f32.vlgmr.msra.gmra.mxu1 %v787_v15 }
  0x16   :  { %666 = vmatprep.subr.mxu0 %v173_v17  ;;  %671 = vmatprep.subr.mxu1 %v763_v3 }
  0x17   :  { %667 = vmatpush3.msra.mxu0 %v173_v17  ;;  %668 = vmatprep.mubr.f32.mxu0 %v107_v19 }
  0x18   :  { %672 = vmatpush3.msra.mxu1 %v763_v3  ;;  %669 = vmatmul.mubr.f32.vlgmr.msra.gmra.mxu0 %v117_v21 }
  0x19   :  { %673 = vmatprep.subr.mxu1 %v765_v4  ;;  %682 = vmatprep.subr.mxu0 %v153_v18 }
  0x1a   :  { %674 = vmatpush3.msra.mxu1 %v765_v4  ;;  %683 = vmatpush3.msra.mxu0 %v153_v18 }
  0x1b   :  { %675 = vmatprep.subr.mxu1 %v767_v5  ;;  %684 = vmatprep.subr.mxu0 %v160_v20 }
  0x1c   :  { %676 = vmatpush3.msra.mxu1 %v767_v5  ;;  %685 = vmatpush3.msra.mxu0 %v160_v20 }
  0x1d   :  { %677 = vmatprep.subr.mxu1 %v778_v9  ;;  %686 = vmatprep.subr.mxu0 %v167_v22 }
  0x1e   :  { %678 = vmatpush3.msra.mxu1 %v778_v9  ;;  %679 = vmatprep.mubr.f32.mxu1 %v108_v25 }
  0x1f   :  { %687 = vmatpush3.msra.mxu0 %v167_v22  ;;  %680 = vmatmul.mubr.f32.vlgmr.msra.gmra.mxu1 %v118_v27 }
  0x20   :  { %688 = vmatprep.subr.mxu0 %v174_v23  ;;  %693 = vmatprep.subr.mxu1 %v763_v3 }
  0x21   :  { %689 = vmatpush3.msra.mxu0 %v174_v23  ;;  %690 = vmatprep.mubr.f32.mxu0 %v784_v13 }
  0x22   :  { %694 = vmatpush3.msra.mxu1 %v763_v3  ;;  %691 = vmatmul.mubr.f32.vlgmr.msra.gmra.mxu0 %v787_v15 }
  0x23   :  { %695 = vmatprep.subr.mxu1 %v765_v4  ;;  %701 = vmatprep.mubr.f32.mxu1 %v784_v13 }
  0x24   :  { %696 = vmatpush3.msra.mxu1 %v765_v4 }
  0x25   :  { %697 = vmatprep.subr.mxu1 %v767_v5 }
  0x26   :  { %698 = vmatpush3.msra.mxu1 %v767_v5 }
  0x27   :  { %699 = vmatprep.subr.mxu1 %v778_v9 }
  0x28   :  { %700 = vmatpush3.msra.mxu1 %v778_v9 }
  0x29   :  { %702 = vmatmul.mubr.f32.vlgmr.msra.gmra.mxu1 %v787_v15 }
  0xd0   :  { %v648_v39 = vpop.f32.mrf.mxu0 }
  0xd2   :  { %v112_v40 = vpop.f32.mrf.mxu0 }
  0xd5   :  { %v659_v41 = vpop.f32.mrf.mxu1 }
  0xd6   :  { %v220_v44 = vadd.f32 %v659_v41, %v648_v39 }
  0xd7   :  { %v213_v42 = vpop.f32.mrf.mxu1 }
  0xd8   :  { %v670_v43 = vpop.f32.mrf.mxu0  ;;  %v214_v46 = vadd.f32 %v213_v42, %v112_v40 }
  0xd9   :  { %v307_v48 = vadd.f32 %v670_v43, %v220_v44 }
  0xda   :  { %v299_v47 = vpop.f32.mrf.mxu0 }
  0xdb   :  { %v300_v51 = vadd.f32 %v299_v47, %v214_v46 }
  0xdf   :  { %v681_v45 = vpop.f32.mrf.mxu1 }
  0xe0   :  { %v392_v52 = vadd.f32 %v681_v45, %v307_v48 }
  0xe1   :  { %v383_v49 = vpop.f32.mrf.mxu1 }
  0xe2   :  { %v692_v50 = vpop.f32.mrf.mxu0  ;;  %v384_v53 = vadd.f32 %v383_v49, %v300_v51 }
  0xe3   :  { %v481_v55 = vadd.f32 %v692_v50, %v392_v52 }
  0xe4   :  { %v474_v54 = vpop.f32.mrf.mxu0 }
  0xe5   :  { %v475_v58 = vadd.f32 %v474_v54, %v384_v53 }
  0xe9   :  { %v703_v57 = vpop.f32.mrf.mxu1 }
  0xea   :  { %v562_v59 = vadd.f32 %v703_v57, %v481_v55 }
  0xeb   :  { %v555_v61 = vpop.f32.mrf.mxu1 }
  0xec   :  { %v566_v62 = vadd.f32 %v562_v59, %v23_v56  ;;  %v556_v63 = vadd.f32 %v555_v61, %v475_v58 }
  0xee   :  { %568 = vst.msk [vmem:[#allocation2 + $0x8] sm:$0xff] %vm19_vm0, %v566_v62  ;;  %v565_v0 = vadd.f32 %v556_v63, %v22_v60 }
  0xf0   :  { %567 = vst.msk [vmem:[#allocation2] sm:$0xff] %vm19_vm0, %v565_v0 }
  0xf5   :  { %v573_v2 = vld [vmem:[#allocation2 + $0x8] sm:$0xff] }
  0xf6   :  { %v582_v3 = vadd.f32 %v601_v1, %v573_v2 }
  0xf7   :  { %v572_v4 = vld [vmem:[#allocation2] sm:$0xff] }
  0xf8   :  { %v581_v5 = vadd.f32 %v601_v1, %v572_v4  ;;  %584 = vst.msk [vmem:[#allocation3 + $0x8] sm:$0xff] %vm19_vm0, %v582_v3 }
  0xfa   :  { %583 = vst.msk [vmem:[#allocation3] sm:$0xff] %vm19_vm0, %v581_v5 }
  0xfb   :  { %719 = shalt.err (!%p716_p4)
}
  0xfc   :  { %s732_s27 = smov 128   ;;  %s733_s2 = smov 8  }
  0xfd   :  { %596 = dma.vmem_to_hbm [thread:$0]  %s591_s25, 256, %s837_s3, [#allocation4], %s732_s27, %s732_s27, %s733_s2  }
  0xfe   :  { %728 = dma.done.wait [#allocation4], 256  }
  0xff   :  { %729 = vsyncadd [#allocation4], 4294967040 }
 0x100   :  { %600 = vsyncpa [#allocation4], 1 }

// kernel: self_attention_pallas.4
= control target key start
LH: loop header
LB: loop body
LE: loop exit
PB: predicated region body
PF: predicated region fallthrough
CT: control target
= control target key end

     0   :  { %s4665_s12 = smov 0   ;;  %s4667_s13 = smov 0   ;;  %s5096_s0 = inlined_call_operand.vmem [shape: f32[2,4,8,8], index: 0, kind: input, shape index: {}]   ;;  %s5097_s1 = inlined_call_operand.vmem [shape: f32[2,4,8,8], index: 1, kind: input, shape index: {}]   ;;  %s5098_s2 = inlined_call_operand.vmem [shape: f32[2,4,8,8], index: 2, kind: input, shape index: {}]   ;;  %s5099_s3 = inlined_call_operand.vmem [shape: f32[2,4,8,8], index: 3, kind: output, shape index: {}]  }
   0x1   :  { %s4669_s14 = smov 0  }
   0x2 LB: > { %s32_s15 = sadd.s32 1, %s4635_s13  ;;  %p4212_p0 = scmp.ge.s32.totalorder %s4639_s14, 1  ;;  %s4639_s14 = sphi %s4669_s14, %s13_s14   ;;  %s4635_s13 = sphi %s4667_s13, %s5101_s13   ;;  %s4631_s12 = sphi %s4665_s12, %s5100_s12  }
   0x3   : > { %p34_p1 = scmp.ge.s32.totalorder %s32_s15, 2  ;;  %p193_p2 = scmp.lt.s32.totalorder %s4639_s14, 3 }
   0x5   : > { %s5103_s15 = smov (%p34_p1, %s32_s15), 0  ;;  %p194_p3 = pnand %p4212_p0, %p193_p2 }
   0x6   : > { %p239_p4 = scmp.lt.s32.totalorder (!%p194_p3), %s4631_s12, 1 }
   0x7   : > { %197 = sbr.rel (%p194_p3) target bundleno = 842 (0x34a), region = 32 }
   0xc   : > { %vm284_vm0 = vcmask 64512   ;;  %v4641_v0 = vmov 0.0   ;;  %vm4642_vm1 = vmmov 0   ;;  %s5105_s12 = smov (!%p239_p4, %s4631_s12), 1  ;;  %vm275_vm2 = vcmask 7168  }
   0xd   : > { %4323 = vmatprep.subr.mxu0 %v4641_v0  ;;  %285 = vst.msk [vmem:[#allocation4] sm:$0xff] %vm284_vm0, %v4641_v0  ;;  %286 = vst.msk [vmem:[#allocation4 + $0x8] sm:$0xff] %vm284_vm0, %v4641_v0  ;;  %4325 = vmatprep.mubr.msk.f32.mxu0 %vm4642_vm1, %v4641_v0  ;;  %s4697_s16 = sshll.u32 %s5105_s12, 5  ;;  %v4643_v57 = vmov -inf  }
   0xe   : > { %287 = vst.msk [vmem:[#allocation4 + $0x10] sm:$0xff] %vm284_vm0, %v4641_v0  ;;  %288 = vst.msk [vmem:[#allocation4 + $0x18] sm:$0xff] %vm284_vm0, %v4641_v0  ;;  %4328 = vmatprep.subr.mxu1 %v4641_v0  ;;  %4330 = vmatprep.mubr.msk.f32.mxu1 %vm4642_vm1, %v4641_v0  ;;  %s4703_s19 = scalar_lea.vmem %s5097_s1, %s4697_s16  ;;  %s4709_s22 = scalar_lea.vmem %s5096_s0, %s4697_s16 }
   0xf   : > { %v293_v1 = vld [vmem:[%s4703_s19] sm:$0xff]  ;;  %v294_v3 = vld [vmem:[%s4703_s19 + $0x8] sm:$0xff]  ;;  %v295_v23 = vld [vmem:[%s4703_s19 + $0x10] sm:$0xff]  ;;  %276 = vst.msk [vmem:[#allocation2] sm:$0xff] %vm275_vm2, %v4643_v57  ;;  %s4887_s25 = scalar_lea.vmem %s5098_s2, %s4697_s16  ;;  %s270_s28 = scalar_lea.vmem %s5099_s3, %s4697_s16 }
  0x10   : > { %v289_v2 = vld [vmem:[%s4709_s22] sm:$0xff]  ;;  %v306_v4 = vsel %vm284_vm0, %v293_v1, 0  ;;  %v758_v6 = vsel %vm284_vm0, %v294_v3, 0  ;;  %v290_v7 = vld [vmem:[%s4709_s22 + $0x8] sm:$0xff]  ;;  %v291_v24 = vld [vmem:[%s4709_s22 + $0x10] sm:$0xff]  ;;  %v1210_v27 = vsel %vm284_vm0, %v295_v23, 0 }
  0x11   : > { %v303_v5 = vsel %vm284_vm0, %v289_v2, 0  ;;  %v339_v8 = vand.u32 4294901760, %v306_v4  ;;  %v755_v10 = vsel %vm284_vm0, %v290_v7, 0  ;;  %v4719_v13 = vand.u32 4294901760, %v758_v6  ;;  %v296_v37 = vld [vmem:[%s4703_s19 + $0x18] sm:$0xff]  ;;  %277 = vst.msk [vmem:[#allocation2 + $0x8] sm:$0xff] %vm275_vm2, %v4643_v57 }
  0x12   : > { %v374_v9 = vand.u32 4294901760, %v303_v5  ;;  %v4721_v14 = vand.u32 4294901760, %v755_v10  ;;  %v1207_v28 = vsel %vm284_vm0, %v291_v24, 0  ;;  %v4738_v31 = vand.u32 4294901760, %v1210_v27  ;;  %v292_v38 = vld [vmem:[%s4709_s22 + $0x18] sm:$0xff]  ;;  %278 = vst.msk [vmem:[#allocation2 + $0x10] sm:$0xff] %vm275_vm2, %v4643_v57 }
  0x13   : > { %4324 = vmatpush3.xpose.msra.mxu0 %v339_v8  ;;  %v416_v12 = vsub.f32 %v306_v4, %v339_v8  ;;  %v868_v19 = vsub.f32 %v758_v6, %v4719_v13  ;;  %v4740_v32 = vand.u32 4294901760, %v1207_v28  ;;  %v1662_v41 = vsel %vm284_vm0, %v296_v37, 0  ;;  %279 = vst.msk [vmem:[#allocation2 + $0x18] sm:$0xff] %vm275_vm2, %v4643_v57  ;;  %280 = vst.msk [vmem:[#allocation3] sm:$0xff] %vm275_vm2, %v4641_v0 }
  0x14   : > { %v375_v11 = vsub.f32 %v303_v5, %v374_v9  ;;  %4333 = vmatprep.subr.mxu0 %v4641_v0  ;;  %v4726_v20 = vsub.f32 %v755_v10, %v4721_v14  ;;  %v1320_v35 = vsub.f32 %v1210_v27, %v4738_v31  ;;  %v1659_v42 = vsel %vm284_vm0, %v292_v38, 0  ;;  %281 = vst.msk [vmem:[#allocation3 + $0x8] sm:$0xff] %vm275_vm2, %v4641_v0 }
  0x15   : > { %v417_v16 = vand.u32 4294901760, %v416_v12  ;;  %v869_v26 = vand.u32 4294901760, %v868_v19  ;;  %v4750_v36 = vsub.f32 %v1207_v28, %v4740_v32  ;;  %v4774_v45 = vand.u32 4294901760, %v1662_v41  ;;  %282 = vst.msk [vmem:[#allocation3 + $0x10] sm:$0xff] %vm275_vm2, %v4641_v0  ;;  %283 = vst.msk [vmem:[#allocation3 + $0x18] sm:$0xff] %vm275_vm2, %v4641_v0 }
  0x16   : > { %v376_v15 = vand.u32 4294901760, %v375_v11  ;;  %v828_v25 = vand.u32 4294901760, %v4726_v20  ;;  %v1321_v40 = vand.u32 4294901760, %v1320_v35  ;;  %v4776_v46 = vand.u32 4294901760, %v1659_v42 }
  0x17   : > { %v418_v18 = vsub.f32 %v416_v12, %v417_v16  ;;  %v870_v30 = vsub.f32 %v868_v19, %v869_v26  ;;  %v1280_v39 = vand.u32 4294901760, %v4750_v36  ;;  %v1772_v49 = vsub.f32 %v1662_v41, %v4774_v45 }
  0x18   : > { %v377_v17 = vsub.f32 %v375_v11, %v376_v15  ;;  %v829_v29 = vsub.f32 %v4726_v20, %v828_v25  ;;  %v1322_v44 = vsub.f32 %v1320_v35, %v1321_v40  ;;  %v1731_v50 = vsub.f32 %v1659_v42, %v4776_v46 }
  0x19   : > { %v419_v22 = vand.u32 4294901760, %v418_v18  ;;  %v871_v34 = vand.u32 4294901760, %v870_v30  ;;  %v1281_v43 = vsub.f32 %v4750_v36, %v1280_v39  ;;  %v1773_v52 = vand.u32 4294901760, %v1772_v49 }
  0x1a   : > { %v378_v21 = vand.u32 4294901760, %v377_v17  ;;  %v830_v33 = vand.u32 4294901760, %v829_v29  ;;  %v1323_v48 = vand.u32 4294901760, %v1322_v44  ;;  %v1732_v51 = vand.u32 4294901760, %v1731_v50 }
  0x1b   : > { %4329 = vmatpush3.xpose.msra.mxu1 %v419_v22  ;;  %v1282_v47 = vand.u32 4294901760, %v1281_v43  ;;  %v1774_v54 = vsub.f32 %v1772_v49, %v1773_v52 }
  0x1c   : > { %4326 = vmatmul.mubr.f32.vlgmr.msra.gmra.mxu0 %v378_v21  ;;  %4338 = vmatprep.subr.mxu1 %v4641_v0  ;;  %v1733_v53 = vsub.f32 %v1731_v50, %v1732_v51 }
  0x1d   : > { %4334 = vmatpush3.xpose.msra.mxu0 %v416_v12  ;;  %4335 = vmatprep.mubr.msk.f32.mxu0 %vm4642_vm1, %v4641_v0  ;;  %v1775_v56 = vand.u32 4294901760, %v1774_v54 }
  0x1e   : > { %4343 = vmatprep.subr.mxu0 %v4641_v0  ;;  %4331 = vmatmul.mubr.f32.vlgmr.msra.gmra.mxu1 %v374_v9  ;;  %v1734_v55 = vand.u32 4294901760, %v1733_v53 }
  0x1f   : > { %4339 = vmatpush3.xpose.msra.mxu1 %v339_v8  ;;  %4340 = vmatprep.mubr.msk.f32.mxu1 %vm4642_vm1, %v4641_v0 }
  0x20   : > { %4336 = vmatmul.mubr.f32.vlgmr.msra.gmra.mxu0 %v375_v11  ;;  %4348 = vmatprep.subr.mxu1 %v4641_v0 }
  0x21   : > { %4344 = vmatpush3.xpose.msra.mxu0 %v417_v16  ;;  %4345 = vmatprep.mubr.msk.f32.mxu0 %vm4642_vm1, %v4641_v0 }
  0x22   : > { %4341 = vmatmul.mubr.f32.vlgmr.msra.gmra.mxu1 %v376_v15  ;;  %4353 = vmatprep.subr.mxu0 %v4641_v0 }
  0x23   : > { %4349 = vmatpush3.xpose.msra.mxu1 %v339_v8  ;;  %4350 = vmatprep.mubr.msk.f32.mxu1 %vm4642_vm1, %v4641_v0 }
  0x24   : > { %4346 = vmatmul.mubr.f32.vlgmr.msra.gmra.mxu0 %v374_v9  ;;  %4358 = vmatprep.subr.mxu1 %v4641_v0 }
  0x25   : > { %4354 = vmatpush3.xpose.msra.mxu0 %v4719_v13  ;;  %4355 = vmatprep.mubr.msk.f32.mxu0 %vm4642_vm1, %v4641_v0 }
  0x26   : > { %4351 = vmatmul.mubr.f32.vlgmr.msra.gmra.mxu1 %v374_v9  ;;  %4363 = vmatprep.subr.mxu0 %v4641_v0 }
  0x27   : > { %4359 = vmatpush3.xpose.msra.mxu1 %v871_v34  ;;  %4360 = vmatprep.mubr.msk.f32.mxu1 %vm4642_vm1, %v4641_v0 }
  0x28   : > { %4356 = vmatmul.mubr.f32.vlgmr.msra.gmra.mxu0 %v830_v33  ;;  %4368 = vmatprep.subr.mxu1 %v4641_v0  ;;  %v4644_v33 = vmov 0  }
  0x29   : > { %4364 = vmatpush3.xpose.msra.mxu0 %v868_v19  ;;  %4365 = vmatprep.mubr.msk.f32.mxu0 %vm4642_vm1, %v4641_v0 }
  0x2a   : > { %4361 = vmatmul.mubr.f32.vlgmr.msra.gmra.mxu1 %v4721_v14  ;;  %4373 = vmatprep.subr.mxu0 %v4641_v0 }
  0x2b   : > { %4369 = vmatpush3.xpose.msra.mxu1 %v4719_v13  ;;  %4370 = vmatprep.mubr.msk.f32.mxu1 %vm4642_vm1, %v4641_v0 }
  0x2c   : > { %4366 = vmatmul.mubr.f32.vlgmr.msra.gmra.mxu0 %v4726_v20  ;;  %4378 = vmatprep.subr.mxu1 %v4641_v0 }
  0x2d   : > { %4374 = vmatpush3.xpose.msra.mxu0 %v869_v26  ;;  %4375 = vmatprep.mubr.msk.f32.mxu0 %vm4642_vm1, %v4641_v0 }
  0x2e   : > { %4371 = vmatmul.mubr.f32.vlgmr.msra.gmra.mxu1 %v828_v25  ;;  %4383 = vmatprep.subr.mxu0 %v4641_v0 }
  0x2f   : > { %4379 = vmatpush3.xpose.msra.mxu1 %v4719_v13  ;;  %4380 = vmatprep.mubr.msk.f32.mxu1 %vm4642_vm1, %v4641_v0 }
  0x30   : > { %4376 = vmatmul.mubr.f32.vlgmr.msra.gmra.mxu0 %v4721_v14  ;;  %4388 = vmatprep.subr.mxu1 %v4641_v0 }
  0x31   : > { %4384 = vmatpush3.xpose.msra.mxu0 %v4738_v31  ;;  %4385 = vmatprep.mubr.msk.f32.mxu0 %vm4642_vm1, %v4641_v0 }
  0x32   : > { %4381 = vmatmul.mubr.f32.vlgmr.msra.gmra.mxu1 %v4721_v14  ;;  %4393 = vmatprep.subr.mxu0 %v4641_v0 }
  0x33   : > { %4389 = vmatpush3.xpose.msra.mxu1 %v1323_v48  ;;  %4390 = vmatprep.mubr.msk.f32.mxu1 %vm4642_vm1, %v4641_v0 }
  0x34   : > { %4386 = vmatmul.mubr.f32.vlgmr.msra.gmra.mxu0 %v1282_v47  ;;  %4398 = vmatprep.subr.mxu1 %v4641_v0 }
  0x35   : > { %4394 = vmatpush3.xpose.msra.mxu0 %v1320_v35  ;;  %4395 = vmatprep.mubr.msk.f32.mxu0 %vm4642_vm1, %v4641_v0 }
  0x36   : > { %4391 = vmatmul.mubr.f32.vlgmr.msra.gmra.mxu1 %v4740_v32  ;;  %4403 = vmatprep.subr.mxu0 %v4641_v0 }
  0x37   : > { %4399 = vmatpush3.xpose.msra.mxu1 %v4738_v31  ;;  %4400 = vmatprep.mubr.msk.f32.mxu1 %vm4642_vm1, %v4641_v0 }
  0x38   : > { %4396 = vmatmul.mubr.f32.vlgmr.msra.gmra.mxu0 %v4750_v36  ;;  %4408 = vmatprep.subr.mxu1 %v4641_v0 }
  0x39   : > { %4404 = vmatpush3.xpose.msra.mxu0 %v1321_v40  ;;  %4405 = vmatprep.mubr.msk.f32.mxu0 %vm4642_vm1, %v4641_v0 }
  0x3a   : > { %4401 = vmatmul.mubr.f32.vlgmr.msra.gmra.mxu1 %v1280_v39  ;;  %4413 = vmatprep.subr.mxu0 %v4641_v0 }
  0x3b   : > { %4409 = vmatpush3.xpose.msra.mxu1 %v4738_v31  ;;  %4410 = vmatprep.mubr.msk.f32.mxu1 %vm4642_vm1, %v4641_v0 }
  0x3c   : > { %4406 = vmatmul.mubr.f32.vlgmr.msra.gmra.mxu0 %v4740_v32  ;;  %4418 = vmatprep.subr.mxu1 %v4641_v0 }
  0x3d   : > { %4414 = vmatpush3.xpose.msra.mxu0 %v4774_v45  ;;  %4415 = vmatprep.mubr.msk.f32.mxu0 %vm4642_vm1, %v4641_v0 }
  0x3e   : > { %4411 = vmatmul.mubr.f32.vlgmr.msra.gmra.mxu1 %v4740_v32  ;;  %4423 = vmatprep.subr.mxu0 %v4641_v0 }
  0x3f   : > { %4419 = vmatpush3.xpose.msra.mxu1 %v1775_v56  ;;  %4420 = vmatprep.mubr.msk.f32.mxu1 %vm4642_vm1, %v4641_v0 }
  0x40   : > { %4416 = vmatmul.mubr.f32.vlgmr.msra.gmra.mxu0 %v1734_v55  ;;  %4428 = vmatprep.subr.mxu1 %v4641_v0 }
  0x41   : > { %4424 = vmatpush3.xpose.msra.mxu0 %v1772_v49  ;;  %4425 = vmatprep.mubr.msk.f32.mxu0 %vm4642_vm1, %v4641_v0 }
  0x42   : > { %4421 = vmatmul.mubr.f32.vlgmr.msra.gmra.mxu1 %v4776_v46  ;;  %4433 = vmatprep.subr.mxu0 %v4641_v0 }
  0x43   : > { %4429 = vmatpush3.xpose.msra.mxu1 %v4774_v45  ;;  %4430 = vmatprep.mubr.msk.f32.mxu1 %vm4642_vm1, %v4641_v0 }
  0x44   : > { %4426 = vmatmul.mubr.f32.vlgmr.msra.gmra.mxu0 %v1731_v50  ;;  %4438 = vmatprep.subr.mxu1 %v4641_v0 }
  0x45   : > { %4434 = vmatpush3.xpose.msra.mxu0 %v1773_v52  ;;  %4435 = vmatprep.mubr.msk.f32.mxu0 %vm4642_vm1, %v4641_v0 }
  0x46   : > { %4431 = vmatmul.mubr.f32.vlgmr.msra.gmra.mxu1 %v1732_v51  ;;  %4443 = vmatprep.subr.mxu0 %v4641_v0 }
  0x47   : > { %4439 = vmatpush3.xpose.msra.mxu1 %v4774_v45  ;;  %4440 = vmatprep.mubr.msk.f32.mxu1 %vm4642_vm1, %v4641_v0 }
  0x48   : > { %4436 = vmatmul.mubr.f32.vlgmr.msra.gmra.mxu0 %v4776_v46  ;;  %4448 = vmatprep.subr.mxu1 %v4641_v0 }
  0x49   : > { %4445 = vmatprep.mubr.msk.f32.mxu0 %vm4642_vm1, %v4641_v0  ;;  %4591 = vset.pattern.permute.xlu0 %v4644_v33 }
  0x4a   : > { %4441 = vmatmul.mubr.f32.vlgmr.msra.gmra.mxu1 %v4776_v46  ;;  %4592 = vset.pattern.permute.xlu1 %v4644_v33 }
  0x4b   : > { %4450 = vmatprep.mubr.msk.f32.mxu1 %vm4642_vm1, %v4641_v0 }
  0xdc   : > { %v380_v58 = vpop.f32.mrf.mxu0 }
  0xde   : > { %v4327_v59 = vpop.f32.mrf.mxu0  ;;  %v456_v60 = vpop.f32.mrf.mxu1 }
  0xdf   : > { %v457_v61 = vadd.f32 %v456_v60, %v380_v58 }
  0xe0   : > { %v530_v62 = vpop.f32.mrf.mxu0  ;;  %v4332_v63 = vpop.f32.mrf.mxu1 }
  0xe1   : > { %v531_v1 = vadd.f32 %v530_v62, %v457_v61 }
  0xe2   : > { %v4337_v2 = vpop.f32.mrf.mxu0  ;;  %v604_v3 = vpop.f32.mrf.mxu1 }
  0xe3   : > { %v605_v4 = vadd.f32 %v604_v3, %v531_v1 }
  0xe4   : > { %v678_v5 = vpop.f32.mrf.mxu0  ;;  %v4342_v6 = vpop.f32.mrf.mxu1 }
  0xe5   : > { %v679_v7 = vadd.f32 %v678_v5, %v605_v4  ;;  %v4873_v5 = vld [vmem:[#allocation2] sm:$0xff] }
  0xe6   : > { %v4347_v8 = vpop.f32.mrf.mxu0  ;;  %v750_v9 = vpop.f32.mrf.mxu1 }
  0xe7   : > { %v4857_v10 = vadd.f32 %v750_v9, %v679_v7  ;;  %v297_v9 = vld [vmem:[%s4887_s25] sm:$0xff] }
  0xe8   : > { %v832_v11 = vpop.f32.mrf.mxu0  ;;  %v4352_v12 = vpop.f32.mrf.mxu1 }
  0xe9   : > { %v2114_v14 = vsel %vm284_vm0, %v4857_v10, -inf  ;;  %v4890_v12 = vld [vmem:[#allocation2 + $0x8] sm:$0xff] }
  0xea   : > { %v4357_v13 = vpop.f32.mrf.mxu0  ;;  %v908_v15 = vpop.f32.mrf.mxu1  ;;  %2115 = vmax.xlane.f32.xlu0 %v2114_v14 }
  0xeb   : > { %v909_v16 = vadd.f32 %v908_v15, %v832_v11  ;;  %v2265_v11 = vand.u32 4294901760, %v297_v9 }
  0xec   : > { %v982_v17 = vpop.f32.mrf.mxu0  ;;  %v4362_v18 = vpop.f32.mrf.mxu1 }
  0xed   : > { %v983_v19 = vadd.f32 %v982_v17, %v909_v16  ;;  %v4892_v13 = vsub.f32 %v297_v9, %v2265_v11  ;;  %4444 = vmatpush3.msra.mxu0 %v2265_v11 }
  0xee   : > { %v4367_v20 = vpop.f32.mrf.mxu0  ;;  %v1056_v21 = vpop.f32.mrf.mxu1  ;;  %4453 = vmatprep.subr.mxu0 %v4641_v0 }
  0xef   : > { %v1057_v22 = vadd.f32 %v1056_v21, %v983_v19  ;;  %v2343_v16 = vand.u32 4294901760, %v4892_v13  ;;  %v4908_v20 = vld [vmem:[#allocation2 + $0x10] sm:$0xff] }
  0xf0   : > { %v1130_v23 = vpop.f32.mrf.mxu0  ;;  %v4372_v24 = vpop.f32.mrf.mxu1 }
  0xf1   : > { %v1131_v25 = vadd.f32 %v1130_v23, %v1057_v22  ;;  %v2344_v18 = vsub.f32 %v4892_v13, %v2343_v16  ;;  %v4918_v24 = vld [vmem:[#allocation2 + $0x18] sm:$0xff] }
  0xf2   : > { %v4377_v26 = vpop.f32.mrf.mxu0  ;;  %v1202_v27 = vpop.f32.mrf.mxu1 }
  0xf3   : > { %v4861_v28 = vadd.f32 %v1202_v27, %v1131_v25  ;;  %v2345_v19 = vand.u32 4294901760, %v2344_v18 }
  0xf4   : > { %v1284_v29 = vpop.f32.mrf.mxu0  ;;  %v4382_v30 = vpop.f32.mrf.mxu1 }
  0xf5   : > { %v2117_v32 = vsel %vm284_vm0, %v4861_v28, -inf  ;;  %4449 = vmatpush3.msra.mxu1 %v2345_v19 }
  0xf6   : > { %v4387_v31 = vpop.f32.mrf.mxu0  ;;  %v1360_v34 = vpop.f32.mrf.mxu1  ;;  %2118 = vmax.xlane.f32.xlu0 %v2117_v32  ;;  %4458 = vmatprep.subr.mxu1 %v4641_v0  ;;  %v298_v32 = vld [vmem:[%s4887_s25 + $0x8] sm:$0xff] }
  0xf7   : > { %v1361_v35 = vadd.f32 %v1360_v34, %v1284_v29  ;;  %v4930_v34 = vand.u32 4294901760, %v298_v32 }
  0xf8   : > { %v1434_v36 = vpop.f32.mrf.mxu0  ;;  %v4392_v37 = vpop.f32.mrf.mxu1 }
  0xf9   : > { %v1435_v38 = vadd.f32 %v1434_v36, %v1361_v35  ;;  %v4934_v37 = vsub.f32 %v298_v32, %v4930_v34 }
  0xfa   : > { %v4397_v39 = vpop.f32.mrf.mxu0  ;;  %v1508_v40 = vpop.f32.mrf.mxu1 }
  0xfb   : > { %v1509_v41 = vadd.f32 %v1508_v40, %v1435_v38 }
  0xfc   : > { %v1582_v42 = vpop.f32.mrf.mxu0  ;;  %v4402_v43 = vpop.f32.mrf.mxu1 }
  0xfd   : > { %v1583_v44 = vadd.f32 %v1582_v42, %v1509_v41  ;;  %v2792_v41 = vand.u32 4294901760, %v4934_v37  ;;  %v299_v43 = vld [vmem:[%s4887_s25 + $0x10] sm:$0xff] }
  0xfe   : > { %v4407_v45 = vpop.f32.mrf.mxu0  ;;  %v1654_v46 = vpop.f32.mrf.mxu1 }
  0xff   : > { %v4865_v47 = vadd.f32 %v1654_v46, %v1583_v44  ;;  %v2793_v45 = vsub.f32 %v4934_v37, %v2792_v41 }
 0x100   : > { %v1736_v48 = vpop.f32.mrf.mxu0  ;;  %v4412_v49 = vpop.f32.mrf.mxu1 }
 0x101   : > { %v2120_v51 = vsel %vm284_vm0, %v4865_v47, -inf }
 0x102   : > { %v4417_v50 = vpop.f32.mrf.mxu0  ;;  %v1812_v52 = vpop.f32.mrf.mxu1  ;;  %2121 = vmax.xlane.f32.xlu1 %v2120_v51 }
 0x103   : > { %v1813_v53 = vadd.f32 %v1812_v52, %v1736_v48  ;;  %v4947_v48 = vand.u32 4294901760, %v299_v43  ;;  %v2794_v52 = vand.u32 4294901760, %v2793_v45 }
 0x104   : > { %v1886_v54 = vpop.f32.mrf.mxu0  ;;  %v4422_v55 = vpop.f32.mrf.mxu1 }
 0x105   : > { %v1887_v56 = vadd.f32 %v1886_v54, %v1813_v53  ;;  %v4953_v53 = vsub.f32 %v299_v43, %v4947_v48 }
 0x106   : > { %v4427_v57 = vpop.f32.mrf.mxu0  ;;  %v1960_v58 = vpop.f32.mrf.mxu1 }
 0x107   : > { %v1961_v59 = vadd.f32 %v1960_v58, %v1887_v56  ;;  %v3241_v57 = vand.u32 4294901760, %v4953_v53 }
 0x108   : > { %v2034_v60 = vpop.f32.mrf.mxu0  ;;  %v4432_v61 = vpop.f32.mrf.mxu1 }
 0x109   : > { %v2035_v62 = vadd.f32 %v2034_v60, %v1961_v59  ;;  %v300_v59 = vld [vmem:[%s4887_s25 + $0x18] sm:$0xff] }
 0x10a   : > { %v4437_v63 = vpop.f32.mrf.mxu0  ;;  %v2106_v1 = vpop.f32.mrf.mxu1 }
 0x10b   : > { %v4869_v2 = vadd.f32 %v2106_v1, %v2035_v62  ;;  %v3242_v1 = vsub.f32 %v4953_v53, %v3241_v57 }
 0x10c   : > { %v4442_v3 = vpop.f32.mrf.mxu1 }
 0x10d   : > { %v2123_v4 = vsel %vm284_vm0, %v4869_v2, -inf  ;;  %v3243_v9 = vand.u32 4294901760, %v3242_v1 }
 0x10e   : > { %2124 = vmax.xlane.f32.xlu1 %v2123_v4  ;;  %v4981_v4 = vand.u32 4294901760, %v300_v59 }
 0x173   : > { %v2116_v6 = vpop.xlane.xlu0 %2115 }
 0x174   : > { %v4876_v7 = vmax.f32 %v4873_v5, %v2116_v6 }
 0x176   : > { %v2130_v8 = vsub.f32 %v4873_v5, %v4876_v7  ;;  %4035 = vst.msk [vmem:[#allocation2] sm:$0xff] %vm275_vm2, %v4876_v7  ;;  %2144 = vperm.xlu0 %4591, %v4876_v7  }
 0x178   : > { %v2134_v32 = vmul.f32 1.442695, %v2130_v8 }
 0x17f   : > { %v2119_v14 = vpop.xlane.xlu0 %2118 }
 0x180   : > { %v4896_v15 = vmax.f32 %v4890_v12, %v2119_v14 }
 0x182   : > { %v2131_v17 = vsub.f32 %v4890_v12, %v4896_v15  ;;  %4036 = vst.msk [vmem:[#allocation2 + $0x8] sm:$0xff] %vm275_vm2, %v4896_v15  ;;  %2149 = vperm.xlu1 %4592, %v4896_v15   ;;  %v4992_v12 = vsub.f32 %v300_v59, %v4981_v4 }
 0x184   : > { %v2136_v60 = vmul.f32 1.442695, %v2131_v17  ;;  %v3690_v17 = vand.u32 4294901760, %v4992_v12 }
 0x18b   : > { %v2122_v21 = vpop.xlane.xlu1 %2121 }
 0x18c   : > { %v4911_v22 = vmax.f32 %v4908_v20, %v2122_v21  ;;  %v3691_v21 = vsub.f32 %v4992_v12, %v3690_v17 }
 0x18e   : > { %v2132_v23 = vsub.f32 %v4908_v20, %v4911_v22  ;;  %4037 = vst.msk [vmem:[#allocation2 + $0x10] sm:$0xff] %vm275_vm2, %v4911_v22  ;;  %2154 = vperm.xlu1 %4592, %v4911_v22  }
 0x190   : > { %v2138_v7 = vmul.f32 1.442695, %v2132_v23 }
 0x197   : > { %v2125_v25 = vpop.xlane.xlu1 %2124 }
 0x198   : > { %v4921_v26 = vmax.f32 %v4918_v24, %v2125_v25 }
 0x19a   : > { %v2133_v27 = vsub.f32 %v4918_v24, %v4921_v26  ;;  %4038 = vst.msk [vmem:[#allocation2 + $0x18] sm:$0xff] %vm275_vm2, %v4921_v26  ;;  %2159 = vperm.xlu1 %4592, %v4921_v26  }
 0x19c   : > { %v2140_v22 = vmul.f32 1.442695, %v2133_v27 }
 0x1f1   : > { %v2145_v29 = vpop.permute.xlu0 %2144 }
 0x1f2   : > { %v2162_v30 = vsub.f32 %v4857_v10, %v2145_v29 }
 0x1f4   : > { %v2166_v31 = vmul.f32 1.442695, %v2162_v30 }
 0x1f6   : > { %4593 = vpow2.f32 %v2166_v31  ;;  %v3692_v31 = vand.u32 4294901760, %v3691_v21 }
 0x1fd   : > { %v2150_v33 = vpop.permute.xlu1 %2149 }
 0x1fe   : > { %v2163_v35 = vsub.f32 %v4861_v28, %v2150_v33 }
 0x200   : > { %v2168_v36 = vmul.f32 1.442695, %v2163_v35 }
 0x202   : > { %4595 = vpow2.f32 %v2168_v36  ;;  %v2174_v36 = vld [vmem:[#allocation3] sm:$0xff] }
 0x203   : > { %v4594_v38 = vpop.eup %4593 }
 0x204   : > { %v2182_v39 = vsel %vm284_vm0, %v4594_v38, 0.0  ;;  %v2232_v40 = vsel %vm284_vm0, %v4594_v38, 0 }
 0x205   : > { %2183 = vadd.xlane.f32.xlu1 %v2182_v39  ;;  %v2300_v10 = vand.u32 4294901760, %v2232_v40 }
 0x207   : > { %v2301_v42 = vsub.f32 %v2232_v40, %v2300_v10  ;;  %4451 = vmatmul.mubr.f32.vlgmr.msra.gmra.mxu1 %v2300_v10  ;;  %v2175_v40 = vld [vmem:[#allocation3 + $0x8] sm:$0xff] }
 0x208   : > { %4459 = vmatpush3.msra.mxu1 %v2265_v11  ;;  %4460 = vmatprep.mubr.msk.f32.mxu1 %vm4642_vm1, %v4641_v0 }
 0x209   : > { %v2155_v28 = vpop.permute.xlu1 %2154  ;;  %v2302_v44 = vand.u32 4294901760, %v2301_v42  ;;  %4468 = vmatprep.subr.mxu1 %v4641_v0 }
 0x20a   : > { %v2164_v46 = vsub.f32 %v4865_v47, %v2155_v28 }
 0x20b   : > { %4461 = vmatmul.mubr.f32.vlgmr.msra.gmra.mxu1 %v2302_v44  ;;  %v2303_v49 = vsub.f32 %v2301_v42, %v2302_v44 }
 0x20c   : > { %v2170_v50 = vmul.f32 1.442695, %v2164_v46  ;;  %4469 = vmatpush3.msra.mxu1 %v2265_v11  ;;  %4470 = vmatprep.mubr.msk.f32.mxu1 %vm4642_vm1, %v4641_v0 }
 0x20d   : > { %v2304_v51 = vand.u32 4294901760, %v2303_v49  ;;  %4478 = vmatprep.subr.mxu1 %v4641_v0  ;;  %v2177_v49 = vld [vmem:[#allocation3 + $0x18] sm:$0xff] }
 0x20e   : > { %4597 = vpow2.f32 %v2170_v50 }
 0x20f   : > { %v4596_v54 = vpop.eup %4595  ;;  %4446 = vmatmul.mubr.f32.vlgmr.msra.gmra.mxu0 %v2304_v51  ;;  %4471 = vmatmul.mubr.f32.vlgmr.msra.gmra.mxu1 %v2300_v10  ;;  %4599 = vpow2.f32 %v2136_v60 }
 0x210   : > { %v2185_v47 = vsel %vm284_vm0, %v4596_v54, 0.0  ;;  %4454 = vmatpush3.msra.mxu0 %v4892_v13  ;;  %4455 = vmatprep.mubr.msk.f32.mxu0 %vm4642_vm1, %v4641_v0  ;;  %v2681_v55 = vsel %vm284_vm0, %v4596_v54, 0 }
 0x211   : > { %2186 = vadd.xlane.f32.xlu0 %v2185_v47  ;;  %4479 = vmatpush3.msra.mxu1 %v2794_v52  ;;  %v2749_v56 = vand.u32 4294901760, %v2681_v55 }
 0x212   : > { %4480 = vmatprep.mubr.msk.f32.mxu1 %vm4642_vm1, %v4641_v0  ;;  %4463 = vmatprep.subr.mxu0 %v4641_v0 }
 0x213   : > { %4456 = vmatmul.mubr.f32.vlgmr.msra.gmra.mxu0 %v2301_v42  ;;  %v2750_v58 = vsub.f32 %v2681_v55, %v2749_v56  ;;  %4481 = vmatmul.mubr.f32.vlgmr.msra.gmra.mxu1 %v2749_v56 }
 0x214   : > { %4488 = vmatprep.subr.mxu1 %v4641_v0  ;;  %4464 = vmatpush3.msra.mxu0 %v2343_v16 }
 0x215   : > { %v2160_v61 = vpop.permute.xlu1 %2159  ;;  %4465 = vmatprep.mubr.msk.f32.mxu0 %vm4642_vm1, %v4641_v0  ;;  %4489 = vmatpush3.msra.mxu1 %v4930_v34  ;;  %v2751_v62 = vand.u32 4294901760, %v2750_v58 }
 0x216   : > { %v2165_v63 = vsub.f32 %v4869_v2, %v2160_v61  ;;  %4490 = vmatprep.mubr.msk.f32.mxu1 %vm4642_vm1, %v4641_v0  ;;  %4473 = vmatprep.subr.mxu0 %v4641_v0 }
 0x217   : > { %4466 = vmatmul.mubr.f32.vlgmr.msra.gmra.mxu0 %v2300_v10  ;;  %4491 = vmatmul.mubr.f32.vlgmr.msra.gmra.mxu1 %v2751_v62  ;;  %v2752_v3 = vsub.f32 %v2750_v58, %v2751_v62 }
 0x218   : > { %v2172_v6 = vmul.f32 1.442695, %v2165_v63  ;;  %4498 = vmatprep.subr.mxu1 %v4641_v0  ;;  %4474 = vmatpush3.msra.mxu0 %v4930_v34 }
 0x219   : > { %4475 = vmatprep.mubr.msk.f32.mxu0 %vm4642_vm1, %v4641_v0  ;;  %4499 = vmatpush3.msra.mxu1 %v4930_v34  ;;  %v2753_v2 = vand.u32 4294901760, %v2752_v3 }
 0x21a   : > { %4601 = vpow2.f32 %v2172_v6  ;;  %4500 = vmatprep.mubr.msk.f32.mxu1 %vm4642_vm1, %v4641_v0  ;;  %4483 = vmatprep.subr.mxu0 %v4641_v0 }
 0x21b   : > { %v4598_v11 = vpop.eup %4597  ;;  %4476 = vmatmul.mubr.f32.vlgmr.msra.gmra.mxu0 %v2753_v2  ;;  %4501 = vmatmul.mubr.f32.vlgmr.msra.gmra.mxu1 %v2749_v56  ;;  %4603 = vpow2.f32 %v2134_v32 }
 0x21c   : > { %4508 = vmatprep.subr.mxu1 %v4641_v0  ;;  %v2188_v13 = vsel %vm284_vm0, %v4598_v11, 0.0  ;;  %4484 = vmatpush3.msra.mxu0 %v4934_v37  ;;  %v3130_v14 = vsel %vm284_vm0, %v4598_v11, 0  ;;  %v5020_v29 = vpop.eup %4599  ;;  %4605 = vpow2.f32 %v2138_v7 }
 0x21d   : > { %2189 = vadd.xlane.f32.xlu1 %v2188_v13  ;;  %4485 = vmatprep.mubr.msk.f32.mxu0 %vm4642_vm1, %v4641_v0  ;;  %v3198_v15 = vand.u32 4294901760, %v3130_v14  ;;  %4607 = vpow2.f32 %v2140_v22 }
 0x21e   : > { %4509 = vmatpush3.msra.mxu1 %v3243_v9  ;;  %4510 = vmatprep.mubr.msk.f32.mxu1 %vm4642_vm1, %v4641_v0 }
 0x21f   : > { %4486 = vmatmul.mubr.f32.vlgmr.msra.gmra.mxu0 %v2750_v58  ;;  %v3199_v16 = vsub.f32 %v3130_v14, %v3198_v15  ;;  %4511 = vmatmul.mubr.f32.vlgmr.msra.gmra.mxu1 %v3198_v15  ;;  %v2203_v14 = vld [vmem:[#allocation4] sm:$0xff] }
 0x220   : > { %4493 = vmatprep.subr.mxu0 %v4641_v0  ;;  %4518 = vmatprep.subr.mxu1 %v4641_v0 }
 0x221   : > { %4494 = vmatpush3.msra.mxu0 %v2792_v41  ;;  %4495 = vmatprep.mubr.msk.f32.mxu0 %vm4642_vm1, %v4641_v0  ;;  %v3200_v18 = vand.u32 4294901760, %v3199_v16  ;;  %v2179_v41 = vmul.f32 %v5020_v29, %v2175_v40 }
 0x222   : > { %4519 = vmatpush3.msra.mxu1 %v4947_v48  ;;  %4520 = vmatprep.mubr.msk.f32.mxu1 %vm4642_vm1, %v4641_v0 }
 0x223   : > { %4496 = vmatmul.mubr.f32.vlgmr.msra.gmra.mxu0 %v2749_v56  ;;  %4521 = vmatmul.mubr.f32.vlgmr.msra.gmra.mxu1 %v3200_v18  ;;  %v3201_v19 = vsub.f32 %v3199_v16, %v3200_v18 }
 0x224   : > { %4503 = vmatprep.subr.mxu0 %v4641_v0  ;;  %4528 = vmatprep.subr.mxu1 %v4641_v0 }
 0x225   : > { %4504 = vmatpush3.msra.mxu0 %v4947_v48  ;;  %4505 = vmatprep.mubr.msk.f32.mxu0 %vm4642_vm1, %v4641_v0  ;;  %v3202_v25 = vand.u32 4294901760, %v3201_v19 }
 0x226   : > { %4529 = vmatpush3.msra.mxu1 %v4947_v48  ;;  %4530 = vmatprep.mubr.msk.f32.mxu1 %vm4642_vm1, %v4641_v0 }
 0x227   : > { %v4602_v30 = vpop.eup %4601  ;;  %2214 = vperm.xlu0 %4591, %v5020_v29   ;;  %4506 = vmatmul.mubr.f32.vlgmr.msra.gmra.mxu0 %v3202_v25 }
 0x228   : > { %4531 = vmatmul.mubr.f32.vlgmr.msra.gmra.mxu1 %v3198_v15  ;;  %4513 = vmatprep.subr.mxu0 %v4641_v0  ;;  %v2191_v33 = vsel %vm284_vm0, %v4602_v30, 0.0  ;;  %v3579_v34 = vsel %vm284_vm0, %v4602_v30, 0  ;;  %v4604_v24 = vpop.eup %4603 }
 0x229   : > { %4538 = vmatprep.subr.mxu1 %v4641_v0  ;;  %2192 = vadd.xlane.f32.xlu1 %v2191_v33  ;;  %v3647_v35 = vand.u32 4294901760, %v3579_v34  ;;  %v4606_v26 = vpop.eup %4605  ;;  %v2178_v37 = vmul.f32 %v4604_v24, %v2174_v36 }
 0x22a   : > { %4514 = vmatpush3.msra.mxu0 %v4953_v53  ;;  %4515 = vmatprep.mubr.msk.f32.mxu0 %vm4642_vm1, %v4641_v0  ;;  %v4608_v27 = vpop.eup %4607 }
 0x22b   : > { %4539 = vmatpush3.msra.mxu1 %v3692_v31  ;;  %4540 = vmatprep.mubr.msk.f32.mxu1 %vm4642_vm1, %v4641_v0  ;;  %v3648_v5 = vsub.f32 %v3579_v34, %v3647_v35  ;;  %v2181_v51 = vmul.f32 %v4608_v27, %v2177_v49 }
 0x22c   : > { %4516 = vmatmul.mubr.f32.vlgmr.msra.gmra.mxu0 %v3199_v16  ;;  %4541 = vmatmul.mubr.f32.vlgmr.msra.gmra.mxu1 %v3647_v35 }
 0x22d   : > { %4523 = vmatprep.subr.mxu0 %v4641_v0  ;;  %4548 = vmatprep.subr.mxu1 %v4641_v0  ;;  %v3649_v8 = vand.u32 4294901760, %v3648_v5 }
 0x22e   : > { %4524 = vmatpush3.msra.mxu0 %v3241_v57  ;;  %4525 = vmatprep.mubr.msk.f32.mxu0 %vm4642_vm1, %v4641_v0 }
 0x22f   : > { %4549 = vmatpush3.msra.mxu1 %v4981_v4  ;;  %4550 = vmatprep.mubr.msk.f32.mxu1 %vm4642_vm1, %v4641_v0  ;;  %v3650_v20 = vsub.f32 %v3648_v5, %v3649_v8 }
 0x230   : > { %4526 = vmatmul.mubr.f32.vlgmr.msra.gmra.mxu0 %v3198_v15  ;;  %4551 = vmatmul.mubr.f32.vlgmr.msra.gmra.mxu1 %v3649_v8 }
 0x231   : > { %4533 = vmatprep.subr.mxu0 %v4641_v0  ;;  %4558 = vmatprep.subr.mxu1 %v4641_v0  ;;  %v3651_v23 = vand.u32 4294901760, %v3650_v20 }
 0x232   : > { %4534 = vmatpush3.msra.mxu0 %v4981_v4  ;;  %4535 = vmatprep.mubr.msk.f32.mxu0 %vm4642_vm1, %v4641_v0 }
 0x233   : > { %4559 = vmatpush3.msra.mxu1 %v4981_v4  ;;  %4560 = vmatprep.mubr.msk.f32.mxu1 %vm4642_vm1, %v4641_v0 }
 0x234   : > { %4536 = vmatmul.mubr.f32.vlgmr.msra.gmra.mxu0 %v3651_v23  ;;  %4561 = vmatmul.mubr.f32.vlgmr.msra.gmra.mxu1 %v3647_v35 }
 0x235   : > { %4543 = vmatprep.subr.mxu0 %v4641_v0  ;;  %4545 = vmatprep.mubr.msk.f32.mxu0 %vm4642_vm1, %v4641_v0 }
 0x236   : > { %4544 = vmatpush3.msra.mxu0 %v4992_v12 }
 0x237   : > { %4553 = vmatprep.subr.mxu0 %v4641_v0 }
 0x238   : > { %4546 = vmatmul.mubr.f32.vlgmr.msra.gmra.mxu0 %v3648_v5 }
 0x239   : > { %4554 = vmatpush3.msra.mxu0 %v3690_v17  ;;  %4555 = vmatprep.mubr.msk.f32.mxu0 %vm4642_vm1, %v4641_v0  ;;  %v2176_v0 = vld [vmem:[#allocation3 + $0x10] sm:$0xff] }
 0x23a   : > { %2209 = vperm.xlu1 %4592, %v4604_v24   ;;  %v2180_v44 = vmul.f32 %v4606_v26, %v2176_v0  ;;  %v2204_v24 = vld [vmem:[#allocation4 + $0x8] sm:$0xff] }
 0x23c   : > { %4556 = vmatmul.mubr.f32.vlgmr.msra.gmra.mxu0 %v3647_v35 }
 0x23e   : > { %2219 = vperm.xlu1 %4592, %v4606_v26  }
 0x242   : > { %2224 = vperm.xlu1 %4592, %v4608_v27  }
 0x28e   : > { %v2184_v38 = vpop.xlane.xlu1 %2183 }
 0x28f   : > { %v2194_v39 = vadd.f32 %v2184_v38, %v2178_v37 }
 0x291   : > { %2199 = vst.msk [vmem:[#allocation3] sm:$0xff] %vm275_vm2, %v2194_v39 }
 0x298   : > { %v4042_v10 = vld [vmem:[#allocation3] sm:$0xff] }
 0x299   : > { %4609 = vrcp.f32 %v4042_v10 }
 0x29a   : > { %v2187_v42 = vpop.xlane.xlu0 %2186 }
 0x29b   : > { %v2195_v43 = vadd.f32 %v2187_v42, %v2179_v41 }
 0x29d   : > { %2200 = vst.msk [vmem:[#allocation3 + $0x8] sm:$0xff] %vm275_vm2, %v2195_v43 }
 0x2a2   : > { %v2215_v22 = vpop.permute.xlu0 %2214 }
 0x2a3   : > { %v2228_v39 = vmul.f32 %v2215_v22, %v2204_v24 }
 0x2a4   : > { %v4043_v28 = vld [vmem:[#allocation3 + $0x8] sm:$0xff] }
 0x2a5   : > { %4611 = vrcp.f32 %v4043_v28 }
 0x2a6   : > { %v4610_v45 = vpop.eup %4609  ;;  %v2190_v46 = vpop.xlane.xlu1 %2189 }
 0x2a7   : > { %v2196_v48 = vadd.f32 %v2190_v46, %v2180_v44  ;;  %4060 = vperm.xlu1 %4592, %v4610_v45  }
 0x2a9   : > { %2201 = vst.msk [vmem:[#allocation3 + $0x10] sm:$0xff] %vm275_vm2, %v2196_v48 }
 0x2b0   : > { %v4044_v50 = vld [vmem:[#allocation3 + $0x10] sm:$0xff] }
 0x2b1   : > { %4613 = vrcp.f32 %v4044_v50 }
 0x2b2   : > { %v4612_v52 = vpop.eup %4611  ;;  %v2193_v53 = vpop.xlane.xlu1 %2192 }
 0x2b3   : > { %v2197_v54 = vadd.f32 %v2193_v53, %v2181_v51  ;;  %4065 = vperm.xlu0 %4591, %v4612_v52   ;;  %v2205_v52 = vld [vmem:[#allocation4 + $0x10] sm:$0xff] }
 0x2b5   : > { %2202 = vst.msk [vmem:[#allocation3 + $0x18] sm:$0xff] %vm275_vm2, %v2197_v54 }
 0x2b6   : > { %v2210_v12 = vpop.permute.xlu1 %2209 }
 0x2b7   : > { %v2227_v21 = vmul.f32 %v2210_v12, %v2203_v14 }
 0x2ba   : > { %v2220_v50 = vpop.permute.xlu1 %2219 }
 0x2bc   : > { %v4045_v47 = vld [vmem:[#allocation3 + $0x18] sm:$0xff] }
 0x2bd   : > { %4615 = vrcp.f32 %v4045_v47 }
 0x2be   : > { %v4614_v55 = vpop.eup %4613 }
 0x2bf   : > { %4070 = vperm.xlu1 %4592, %v4614_v55  }
 0x2c7   : > { %v2382_v56 = vpop.f32.mrf.mxu1 }
 0x2c9   : > { %v4452_v57 = vpop.f32.mrf.mxu1 }
 0x2ca   : > { %v4616_v58 = vpop.eup %4615  ;;  %v2229_v57 = vmul.f32 %v2220_v50, %v2205_v52 }
 0x2cb   : > { %v2530_v59 = vpop.f32.mrf.mxu1  ;;  %4075 = vperm.xlu0 %4591, %v4616_v58  }
 0x2cd   : > { %v4462_v60 = vpop.f32.mrf.mxu1 }
 0x2cf   : > { %v2306_v61 = vpop.f32.mrf.mxu0  ;;  %v2676_v62 = vpop.f32.mrf.mxu1 }
 0x2d0   : > { %v2383_v3 = vadd.f32 %v2382_v56, %v2306_v61 }
 0x2d1   : > { %v4447_v63 = vpop.f32.mrf.mxu0  ;;  %v4472_v1 = vpop.f32.mrf.mxu1 }
 0x2d3   : > { %v2456_v4 = vpop.f32.mrf.mxu0  ;;  %v2831_v6 = vpop.f32.mrf.mxu1 }
 0x2d4   : > { %v2457_v2 = vadd.f32 %v2456_v4, %v2383_v3 }
 0x2d5   : > { %v4457_v9 = vpop.f32.mrf.mxu0  ;;  %v4482_v11 = vpop.f32.mrf.mxu1 }
 0x2d6   : > { %v2531_v13 = vadd.f32 %v2530_v59, %v2457_v2  ;;  %v2206_v9 = vld [vmem:[#allocation4 + $0x18] sm:$0xff]  ;;  %v2225_v11 = vpop.permute.xlu1 %2224 }
 0x2d7   : > { %v2604_v15 = vpop.f32.mrf.mxu0  ;;  %v2979_v16 = vpop.f32.mrf.mxu1 }
 0x2d8   : > { %v2605_v17 = vadd.f32 %v2604_v15, %v2531_v13  ;;  %v2230_v15 = vmul.f32 %v2225_v11, %v2206_v9 }
 0x2d9   : > { %v4467_v18 = vpop.f32.mrf.mxu0  ;;  %v4492_v19 = vpop.f32.mrf.mxu1 }
 0x2da   : > { %v2677_v25 = vadd.f32 %v2676_v62, %v2605_v17 }
 0x2db   : > { %v2755_v29 = vpop.f32.mrf.mxu0  ;;  %v3125_v30 = vpop.f32.mrf.mxu1 }
 0x2dc   : > { %v4027_v31 = vadd.f32 %v2677_v25, %v2227_v21  ;;  %v2832_v34 = vadd.f32 %v2831_v6, %v2755_v29 }
 0x2dd   : > { %v4477_v32 = vpop.f32.mrf.mxu0  ;;  %v4502_v33 = vpop.f32.mrf.mxu1 }
 0x2de   : > { %4031 = vst.msk [vmem:[#allocation4] sm:$0xff] %vm284_vm0, %v4027_v31 }
 0x2df   : > { %v2905_v35 = vpop.f32.mrf.mxu0  ;;  %v3280_v5 = vpop.f32.mrf.mxu1 }
 0x2e0   : > { %v2906_v7 = vadd.f32 %v2905_v35, %v2832_v34 }
 0x2e1   : > { %v4487_v8 = vpop.f32.mrf.mxu0  ;;  %v4512_v20 = vpop.f32.mrf.mxu1 }
 0x2e2   : > { %v2980_v23 = vadd.f32 %v2979_v16, %v2906_v7 }
 0x2e3   : > { %v3053_v26 = vpop.f32.mrf.mxu0  ;;  %v3428_v27 = vpop.f32.mrf.mxu1 }
 0x2e4   : > { %v3054_v36 = vadd.f32 %v3053_v26, %v2980_v23 }
 0x2e5   : > { %v4497_v37 = vpop.f32.mrf.mxu0  ;;  %v4522_v38 = vpop.f32.mrf.mxu1  ;;  %v4054_v19 = vld [vmem:[#allocation4] sm:$0xff] }
 0x2e6   : > { %v3126_v40 = vadd.f32 %v3125_v30, %v3054_v36 }
 0x2e7   : > { %v3204_v10 = vpop.f32.mrf.mxu0 }
 0x2e8   : > { %v4028_v41 = vadd.f32 %v3126_v40, %v2228_v39  ;;  %v3574_v42 = vpop.f32.mrf.mxu1  ;;  %v3281_v28 = vadd.f32 %v3280_v5, %v3204_v10 }
 0x2e9   : > { %v4507_v43 = vpop.f32.mrf.mxu0 }
 0x2ea   : > { %4032 = vst.msk [vmem:[#allocation4 + $0x8] sm:$0xff] %vm284_vm0, %v4028_v41  ;;  %v4532_v0 = vpop.f32.mrf.mxu1 }
 0x2ec   : > { %v3354_v44 = vpop.f32.mrf.mxu0  ;;  %v3729_v45 = vpop.f32.mrf.mxu1 }
 0x2ed   : > { %v3355_v46 = vadd.f32 %v3354_v44, %v3281_v28 }
 0x2ee   : > { %v4517_v48 = vpop.f32.mrf.mxu0  ;;  %v4542_v49 = vpop.f32.mrf.mxu1 }
 0x2ef   : > { %v3429_v51 = vadd.f32 %v3428_v27, %v3355_v46 }
 0x2f0   : > { %v3502_v53 = vpop.f32.mrf.mxu0  ;;  %v3877_v54 = vpop.f32.mrf.mxu1 }
 0x2f1   : > { %v3503_v47 = vadd.f32 %v3502_v53, %v3429_v51  ;;  %v4055_v29 = vld [vmem:[#allocation4 + $0x8] sm:$0xff] }
 0x2f2   : > { %v4527_v55 = vpop.f32.mrf.mxu0  ;;  %v4552_v56 = vpop.f32.mrf.mxu1 }
 0x2f3   : > { %v3575_v58 = vadd.f32 %v3574_v42, %v3503_v47 }
 0x2f4   : > { %v3653_v59 = vpop.f32.mrf.mxu0  ;;  %v4023_v60 = vpop.f32.mrf.mxu1 }
 0x2f5   : > { %v4029_v61 = vadd.f32 %v3575_v58, %v2229_v57  ;;  %v3730_v1 = vadd.f32 %v3729_v45, %v3653_v59 }
 0x2f6   : > { %v4537_v62 = vpop.f32.mrf.mxu0  ;;  %v4562_v63 = vpop.f32.mrf.mxu1 }
 0x2f7   : > { %4033 = vst.msk [vmem:[#allocation4 + $0x10] sm:$0xff] %vm284_vm0, %v4029_v61 }
 0x2f8   : > { %v3803_v3 = vpop.f32.mrf.mxu0 }
 0x2f9   : > { %v3804_v4 = vadd.f32 %v3803_v3, %v3730_v1 }
 0x2fa   : > { %v4547_v6 = vpop.f32.mrf.mxu0 }
 0x2fb   : > { %v3878_v2 = vadd.f32 %v3877_v54, %v3804_v4 }
 0x2fc   : > { %v3951_v12 = vpop.f32.mrf.mxu0 }
 0x2fd   : > { %v3952_v13 = vadd.f32 %v3951_v12, %v3878_v2 }
 0x2fe   : > { %v4557_v14 = vpop.f32.mrf.mxu0  ;;  %v4056_v32 = vld [vmem:[#allocation4 + $0x10] sm:$0xff] }
 0x2ff   : > { %v4024_v16 = vadd.f32 %v4023_v60, %v3952_v13 }
 0x301   : > { %v4030_v17 = vadd.f32 %v4024_v16, %v2230_v15 }
 0x303   : > { %4034 = vst.msk [vmem:[#allocation4 + $0x18] sm:$0xff] %vm284_vm0, %v4030_v17 }
 0x30a   : > { %v4057_v35 = vld [vmem:[#allocation4 + $0x18] sm:$0xff] }
 0x322   : > { %v4061_v18 = vpop.permute.xlu1 %4060 }
 0x323   : > { %v4078_v21 = vmul.f32 %v4061_v18, %v4054_v19 }
 0x325   : > { %4082 = vst.msk [vmem:[%s270_s28] sm:$0xff] %vm284_vm0, %v4078_v21 }
 0x32e   : > { %v4066_v25 = vpop.permute.xlu0 %4065 }
 0x32f   : > { %v4079_v30 = vmul.f32 %v4066_v25, %v4055_v29 }
 0x331   : > { %4083 = vst.msk [vmem:[%s270_s28 + $0x8] sm:$0xff] %vm284_vm0, %v4079_v30 }
 0x33a   : > { %v4071_v31 = vpop.permute.xlu1 %4070 }
 0x33b   : > { %v4080_v33 = vmul.f32 %v4071_v31, %v4056_v32 }
 0x33d   : > { %4084 = vst.msk [vmem:[%s270_s28 + $0x10] sm:$0xff] %vm284_vm0, %v4080_v33 }
 0x346   : > { %v4076_v34 = vpop.permute.xlu0 %4075 }
 0x347   : > { %v4081_v5 = vmul.f32 %v4076_v34, %v4057_v35 }
 0x349   : > { %4085 = vst.msk [vmem:[%s270_s28 + $0x18] sm:$0xff] %vm284_vm0, %v4081_v5 }
 0x34a PF: > { %s13_s14 = sadd.s32 1, %s4639_s14   ;;  %s5100_s12 = smov %s4635_s13 }
 0x34b   : > { %p10_p5 = scmp.ge.s32.totalorder %s13_s14, 4   ;;  %s5101_s13 = smov %s5103_s15 }
 0x34d   :  { %12 = sbr.rel (!%p10_p5) target bundleno = 2 (0x2), region = 76 }

</bundles_post_ra>
